<compile_context>
chip_gen: v5e
topology: v5e:2x2
jax: 0.10.0
libtpu: 0.0.40
codegen_flags: <defaults>
</compile_context>

<pallas_src>
import functools

import jax
import jax.numpy as jnp
import numpy as np
from jax.experimental import pallas as pl
from jax.experimental.pallas import tpu as pltpu


def _round_up(x, m):
    return ((x + m - 1) // m) * m


def _fused_loss_kernel(x_ref, y_ref, w1u_ref, w1d_ref, w2u_ref, w2d_ref, wlm_ref,
                       loss_ref,
                       x2_ref, m_ref, l_ref, p_ref, acc_ref,
                       *, n_tokens, n_tokens_pad, n_vocab, n_vocab_pad, tm, tv,
                       tiles_per_core):
    c = pl.program_id(0)        # core-split index
    i = pl.program_id(1)        # token tile within this core's range
    v = pl.program_id(2)        # vocab tile
    ni = pl.num_programs(1)
    nv = pl.num_programs(2)

    neg_big = jnp.float32(-1e30)

    # Reset the per-core loss accumulator at the start of this core's sub-grid.
    @pl.when((i == 0) & (v == 0))
    def _init_core():
        acc_ref[...] = jnp.zeros_like(acc_ref)

    # ---- MLP chain: run once per token tile (first vocab step), cache in VMEM ----
    @pl.when(v == 0)
    def _mlp():
        x = x_ref[...]                                                      # (tm, H) bf16
        h1 = jnp.dot(x, w1u_ref[...], preferred_element_type=jnp.float32)   # (tm, 2H) f32
        h1 = jnp.maximum(h1, 0.0).astype(x.dtype)
        x1 = jnp.dot(h1, w1d_ref[...],
                     preferred_element_type=jnp.float32).astype(x.dtype)    # (tm, H)
        h2 = jnp.dot(x1, w2u_ref[...], preferred_element_type=jnp.float32)  # (tm, 2H)
        h2 = jnp.maximum(h2, 0.0).astype(x.dtype)
        x2 = jnp.dot(h2, w2d_ref[...], preferred_element_type=jnp.float32)  # (tm, H)
        x2_ref[...] = x2.astype(x2_ref.dtype)
        # reset the online-softmax state for this token tile
        m_ref[...] = jnp.full(m_ref.shape, neg_big, m_ref.dtype)
        l_ref[...] = jnp.zeros_like(l_ref)
        p_ref[...] = jnp.zeros_like(p_ref)

    # ---- lm_head vocab tile + online logsumexp / picked-logit update ----
    logits = jnp.dot(x2_ref[...], wlm_ref[...],
                     preferred_element_type=jnp.float32)                    # (tm, tv) f32
    vocab_ids = v * tv + jax.lax.broadcasted_iota(jnp.int32, (tm, tv), 1)
    if n_vocab_pad != n_vocab:
        logits = jnp.where(vocab_ids < n_vocab, logits, neg_big)

    labels = y_ref[...]                                                     # (tm, 1) i32
    p_ref[...] += jnp.sum(jnp.where(vocab_ids == labels, logits, 0.0),
                          axis=-1, keepdims=True)                           # (tm, 1)

    m_old = m_ref[...]
    m_new = jnp.maximum(m_old, jnp.max(logits, axis=-1, keepdims=True))
    alpha = jnp.exp(m_old - m_new)
    l_ref[...] = alpha * l_ref[...] + jnp.sum(jnp.exp(logits - m_new),
                                              axis=-1, keepdims=True)
    m_ref[...] = m_new

    # ---- finish this token tile: per-token NLL, masked for padded tokens ----
    @pl.when(v == nv - 1)
    def _tile_done():
        nll = m_ref[...] + jnp.log(l_ref[...]) - p_ref[...]                 # (tm, 1)
        if n_tokens_pad != n_tokens:
            token_ids = (c * tiles_per_core + i) * tm + \
                jax.lax.broadcasted_iota(jnp.int32, (tm, 1), 0)
            nll = jnp.where(token_ids < n_tokens, nll, 0.0)
        acc_ref[...] += jnp.sum(nll, axis=0, keepdims=True)                 # (1, 1)

        # Last token tile of this core: publish the partial sum (lane-dense slab).
        @pl.when(i == ni - 1)
        def _core_done():
            loss_ref[...] = jnp.broadcast_to(acc_ref[...], loss_ref.shape)


def mymodel_loss_pallas(x, y, params, *, tm=256, tv=512, n_core_splits=2,
                        single_buffer_weights=True,
                        compute_dtype=jnp.bfloat16):
    """x: [B, S, H] f32, y: [B, S] int -> scalar mean cross-entropy loss."""
    w1u, w1d, w2u, w2d, wlm = params            # already [in, out]
    B, S, H = x.shape
    N = B * S
    V = wlm.shape[1]

    # ---- token tiling (split across cores; multiple of 16 for bf16 packing) ----
    per_core = -(-N // n_core_splits)
    tm = _round_up(max(1, min(tm, per_core)), 16)
    tiles_per_core = -(-per_core // tm)
    n_pad = n_core_splits * tiles_per_core * tm

    # ---- vocab tiling ----
    tv = min(_round_up(tv, 128), _round_up(V, 128))
    v_pad = _round_up(V, tv)
    n_vocab_tiles = v_pad // tv

    # ---- operand prep: flatten, pad, cast matmul operands to bf16 ----
    x2d = x.reshape(N, H).astype(compute_dtype)
    y2d = y.reshape(N, 1).astype(jnp.int32)
    if n_pad != N:
        x2d = jnp.pad(x2d, ((0, n_pad - N), (0, 0)))
        y2d = jnp.pad(y2d, ((0, n_pad - N), (0, 0)))
    w1u_c, w1d_c, w2u_c, w2d_c = (w.astype(compute_dtype)
                                  for w in (w1u, w1d, w2u, w2d))
    wlm_c = wlm.astype(compute_dtype)
    if v_pad != V:
        wlm_c = jnp.pad(wlm_c, ((0, 0), (0, v_pad - V)))

    kernel = functools.partial(
        _fused_loss_kernel,
        n_tokens=N, n_tokens_pad=n_pad, n_vocab=V, n_vocab_pad=v_pad,
        tm=tm, tv=tv, tiles_per_core=tiles_per_core)

    def const_weight_spec(shape):
        idx = lambda c, i, v: (0,) * len(shape)
        if single_buffer_weights:
            # Constant index_map -> single buffer; halves resident weight VMEM.
            return pl.BlockSpec(shape, idx, pipeline_mode=pl.Buffered(1))
        return pl.BlockSpec(shape, idx)

    tok_idx = lambda c, i, v: (c * tiles_per_core + i, 0)

    flops = 16 * n_pad * H * H + 2 * n_pad * H * v_pad
    bytes_accessed = (x2d.size * x2d.dtype.itemsize + y2d.size * 4
                      + sum(w.size * 2 for w in (w1u_c, w1d_c, w2u_c, w2d_c))
                      + wlm_c.size * 2 + n_core_splits * 8 * 128 * 4)
    cost = pl.CostEstimate(flops=int(flops),
                           transcendentals=int(n_pad * (v_pad + 1)),
                           bytes_accessed=int(bytes_accessed))

    out = pl.pallas_call(
        kernel,
        out_shape=jax.ShapeDtypeStruct((n_core_splits, 8, 128), jnp.float32),
        grid_spec=pltpu.PrefetchScalarGridSpec(
            num_scalar_prefetch=0,
            grid=(n_core_splits, tiles_per_core, n_vocab_tiles),
            in_specs=[
                pl.BlockSpec((tm, H), tok_idx),                 # x token tile
                pl.BlockSpec((tm, 1), tok_idx),                 # labels
                const_weight_spec((H, 2 * H)),                  # mlp1.up_proj
                const_weight_spec((2 * H, H)),                  # mlp1.down_proj
                const_weight_spec((H, 2 * H)),                  # mlp2.up_proj
                const_weight_spec((2 * H, H)),                  # mlp2.down_proj
                pl.BlockSpec((H, tv), lambda c, i, v: (0, v)),  # lm_head vocab tile
            ],
            out_specs=pl.BlockSpec((1, 8, 128), lambda c, i, v: (c, 0, 0)),
            scratch_shapes=[
                pltpu.VMEM((tm, H), compute_dtype),   # cached MLP output (x2)
                pltpu.VMEM((tm, 1), jnp.float32),     # running max
                pltpu.VMEM((tm, 1), jnp.float32),     # running sum-exp
                pltpu.VMEM((tm, 1), jnp.float32),     # picked (label) logit
                pltpu.VMEM((1, 1), jnp.float32),      # per-core loss accumulator
            ],
        ),
        compiler_params=pltpu.CompilerParams(
            dimension_semantics=("parallel", "arbitrary", "arbitrary"),
            vmem_limit_bytes=64 * 1024 * 1024),
        cost_estimate=cost,
    )(x2d, y2d, w1u_c, w1d_c, w2u_c, w2d_c, wlm_c)

    return jnp.sum(out[:, 0, 0]) / jnp.float32(N)


def init_params(key, hidden_dim, vocab_size):
    """Deterministic init mimicking torch Linear uniform(-1/sqrt(fan_in), +)."""
    ks = jax.random.split(key, 5)

    def linear_w(k, fan_in, fan_out):
        bound = 1.0 / np.sqrt(fan_in)
        # Stored as [in, out] (transpose of PyTorch's [out, in]).
        return jax.random.uniform(k, (fan_in, fan_out), jnp.float32, -bound, bound)

    w1u = linear_w(ks[0], hidden_dim, 2 * hidden_dim)   # mlp1.up_proj
    w1d = linear_w(ks[1], 2 * hidden_dim, hidden_dim)   # mlp1.down_proj
    w2u = linear_w(ks[2], hidden_dim, 2 * hidden_dim)   # mlp2.up_proj
    w2d = linear_w(ks[3], 2 * hidden_dim, hidden_dim)   # mlp2.down_proj
    wlm = linear_w(ks[4], hidden_dim, vocab_size)       # lm_head
    return (w1u, w1d, w2u, w2d, wlm)


def mymodel_loss_ref(x, y, params, compute_dtype=jnp.float32):
    """Pure-JAX reference of the forward (optionally with bf16 matmul operands)."""
    w1u, w1d, w2u, w2d, wlm = params
    B, S, H = x.shape
    xh = x.reshape(-1, H)
    y1d = y.reshape(-1)

    def mm(a, b):
        return jnp.dot(a.astype(compute_dtype), b.astype(compute_dtype),
                       preferred_element_type=jnp.float32)

    h = jnp.maximum(mm(xh, w1u), 0.0)
    h = mm(h, w1d)
    h = jnp.maximum(mm(h, w2u), 0.0)
    h = mm(h, w2d)
    logits = mm(h, wlm)
    lse = jax.nn.logsumexp(logits, axis=-1)
    nll = lse - logits[jnp.arange(logits.shape[0]), y1d]
    return jnp.mean(nll)


if __name__ == "__main__":
    # TODO(synk): CrossEntropyLoss ignore_index=-100 semantics are not implemented
    # (the spec never produces ignored labels).
    batch, seq, hidden_dim, vocab_size = 2, 8, 32, 128

    key = jax.random.PRNGKey(0)
    kx, ky, kp = jax.random.split(key, 3)

    x = jax.random.normal(kx, (batch, seq, hidden_dim), jnp.float32)
    y = jax.random.randint(ky, (batch, seq), 0, vocab_size, jnp.int32)
    params = init_params(kp, hidden_dim, vocab_size)

    try:
        loss = jax.block_until_ready(mymodel_loss_pallas(x, y, params))
    except Exception:
        # Fallback for JAX versions without BlockSpec(pipeline_mode=pl.Buffered(1)).
        loss = jax.block_until_ready(
            mymodel_loss_pallas(x, y, params, single_buffer_weights=False))

    ref_mixed = jax.block_until_ready(mymodel_loss_ref(x, y, params, jnp.bfloat16))
    ref_f32 = jax.block_until_ready(mymodel_loss_ref(x, y, params, jnp.float32))

    # Tight check against the matching mixed-precision reference, loose check vs f32.
    np.testing.assert_allclose(np.asarray(loss), np.asarray(ref_mixed),
                               rtol=5e-3, atol=5e-3)
    np.testing.assert_allclose(np.asarray(loss), np.asarray(ref_f32),
                               rtol=1e-1, atol=1e-1)

    print("KERNEL_OK")
</pallas_src>

<mosaic_0001>
module attributes {stable_mosaic.version = 11 : i64} {
  func.func @_fused_loss_kernel(%arg0: i32, %arg1: i32, %arg2: i32, %arg3: memref<16x32xbf16, #tpu.memory_space<vmem>>, %arg4: memref<16x1xi32, #tpu.memory_space<vmem>>, %arg5: memref<32x64xbf16, #tpu.memory_space<vmem>>, %arg6: memref<64x32xbf16, #tpu.memory_space<vmem>>, %arg7: memref<32x64xbf16, #tpu.memory_space<vmem>>, %arg8: memref<64x32xbf16, #tpu.memory_space<vmem>>, %arg9: memref<32x128xbf16, #tpu.memory_space<vmem>>, %arg10: memref<1x8x128xf32, #tpu.memory_space<vmem>>, %arg11: memref<16x32xbf16, #tpu.memory_space<vmem>>, %arg12: memref<16x1xf32, #tpu.memory_space<vmem>>, %arg13: memref<16x1xf32, #tpu.memory_space<vmem>>, %arg14: memref<16x1xf32, #tpu.memory_space<vmem>>, %arg15: memref<1x1xf32, #tpu.memory_space<vmem>>) attributes {dimension_semantics = [#tpu.dimension_semantics<parallel>, #tpu.dimension_semantics<arbitrary>, #tpu.dimension_semantics<arbitrary>], iteration_bounds = array<i64: 2, 1, 1>, scalar_prefetch = 0 : i64, scratch_operands = 5 : i64, tpu.core_type = #tpu.core_type<tc>, window_params = [{transform_indices = @transform_0, window_bounds = array<i64: 16, 32>}, {transform_indices = @transform_1, window_bounds = array<i64: 16, 1>}, {pipeline_mode = #tpu.pipeline_mode<synchronous>, transform_indices = @transform_2, window_bounds = array<i64: 32, 64>}, {pipeline_mode = #tpu.pipeline_mode<synchronous>, transform_indices = @transform_3, window_bounds = array<i64: 64, 32>}, {pipeline_mode = #tpu.pipeline_mode<synchronous>, transform_indices = @transform_4, window_bounds = array<i64: 32, 64>}, {pipeline_mode = #tpu.pipeline_mode<synchronous>, transform_indices = @transform_5, window_bounds = array<i64: 64, 32>}, {transform_indices = @transform_6, window_bounds = array<i64: 32, 128>}, {transform_indices = @transform_7, window_bounds = array<i64: 1, 8, 128>}]} {
    %c0_i32 = arith.constant 0 : i32
    %0 = arith.cmpi eq, %arg1, %c0_i32 : i32
    %c0_i32_0 = arith.constant 0 : i32
    %1 = arith.cmpi eq, %arg2, %c0_i32_0 : i32
    %2 = arith.andi %0, %1 : i1
    %3 = arith.extui %2 : i1 to i32
    %c0_i32_1 = arith.constant 0 : i32
    %4 = arith.cmpi ne, %3, %c0_i32_1 : i32
    scf.if %4 {
      %cst_28 = arith.constant 0.000000e+00 : f32
      %44 = vector.broadcast %cst_28 : f32 to vector<1x1xf32>
      %c0_29 = arith.constant 0 : index
      %c0_30 = arith.constant 0 : index
      %45 = vector.load %arg15[%c0_29, %c0_30] : memref<1x1xf32, #tpu.memory_space<vmem>>, vector<1x1xf32>
      tpu.vector_store %arg15[%c0_29, %c0_30], %44 {strides = array<i32>} : memref<1x1xf32, #tpu.memory_space<vmem>>, vector<1x1xf32>,
    } else {
    }
    %c0_i32_2 = arith.constant 0 : i32
    %5 = arith.cmpi eq, %arg2, %c0_i32_2 : i32
    %6 = arith.extui %5 : i1 to i32
    %cst = arith.constant -1.000000e+30 : f32
    %c0_i32_3 = arith.constant 0 : i32
    %7 = arith.cmpi ne, %6, %c0_i32_3 : i32
    scf.if %7 {
      %c0_28 = arith.constant 0 : index
      %c0_29 = arith.constant 0 : index
      %44 = vector.load %arg3[%c0_28, %c0_29] : memref<16x32xbf16, #tpu.memory_space<vmem>>, vector<16x32xbf16>
      %c0_30 = arith.constant 0 : index
      %c0_31 = arith.constant 0 : index
      %45 = vector.load %arg5[%c0_30, %c0_31] : memref<32x64xbf16, #tpu.memory_space<vmem>>, vector<32x64xbf16>
      %cst_32 = arith.constant dense<0.000000e+00> : vector<16x64xf32>
      %46 = tpu.matmul %44, %45, %cst_32 {dimension_numbers = #tpu.dot_dimension_numbers<[1], [0], [0], [1], [0, 0, 1, 1], [], []>} : vector<16x32xbf16>, vector<32x64xbf16>, vector<16x64xf32> -> vector<16x64xf32>
      %cst_33 = arith.constant 0.000000e+00 : f32
      %47 = vector.broadcast %cst_33 : f32 to vector<16x64xf32>
      %48 = arith.maximumf %46, %47 : vector<16x64xf32>
      %49 = arith.truncf %48 : vector<16x64xf32> to vector<16x64xbf16>
      %c0_34 = arith.constant 0 : index
      %c0_35 = arith.constant 0 : index
      %50 = vector.load %arg6[%c0_34, %c0_35] : memref<64x32xbf16, #tpu.memory_space<vmem>>, vector<64x32xbf16>
      %cst_36 = arith.constant dense<0.000000e+00> : vector<16x32xf32>
      %51 = tpu.matmul %49, %50, %cst_36 {dimension_numbers = #tpu.dot_dimension_numbers<[1], [0], [0], [1], [0, 0, 1, 1], [], []>} : vector<16x64xbf16>, vector<64x32xbf16>, vector<16x32xf32> -> vector<16x32xf32>
      %52 = arith.truncf %51 : vector<16x32xf32> to vector<16x32xbf16>
      %c0_37 = arith.constant 0 : index
      %c0_38 = arith.constant 0 : index
      %53 = vector.load %arg7[%c0_37, %c0_38] : memref<32x64xbf16, #tpu.memory_space<vmem>>, vector<32x64xbf16>
      %cst_39 = arith.constant dense<0.000000e+00> : vector<16x64xf32>
      %54 = tpu.matmul %52, %53, %cst_39 {dimension_numbers = #tpu.dot_dimension_numbers<[1], [0], [0], [1], [0, 0, 1, 1], [], []>} : vector<16x32xbf16>, vector<32x64xbf16>, vector<16x64xf32> -> vector<16x64xf32>
      %cst_40 = arith.constant 0.000000e+00 : f32
      %55 = vector.broadcast %cst_40 : f32 to vector<16x64xf32>
      %56 = arith.maximumf %54, %55 : vector<16x64xf32>
      %57 = arith.truncf %56 : vector<16x64xf32> to vector<16x64xbf16>
      %c0_41 = arith.constant 0 : index
      %c0_42 = arith.constant 0 : index
      %58 = vector.load %arg8[%c0_41, %c0_42] : memref<64x32xbf16, #tpu.memory_space<vmem>>, vector<64x32xbf16>
      %cst_43 = arith.constant dense<0.000000e+00> : vector<16x32xf32>
      %59 = tpu.matmul %57, %58, %cst_43 {dimension_numbers = #tpu.dot_dimension_numbers<[1], [0], [0], [1], [0, 0, 1, 1], [], []>} : vector<16x64xbf16>, vector<64x32xbf16>, vector<16x32xf32> -> vector<16x32xf32>
      %60 = arith.truncf %59 : vector<16x32xf32> to vector<16x32xbf16>
      %c0_44 = arith.constant 0 : index
      %c0_45 = arith.constant 0 : index
      %61 = vector.load %arg11[%c0_44, %c0_45] : memref<16x32xbf16, #tpu.memory_space<vmem>>, vector<16x32xbf16>
      tpu.vector_store %arg11[%c0_44, %c0_45], %60 {strides = array<i32>} : memref<16x32xbf16, #tpu.memory_space<vmem>>, vector<16x32xbf16>,
      %62 = vector.broadcast %cst : f32 to vector<16x1xf32>
      %c0_46 = arith.constant 0 : index
      %c0_47 = arith.constant 0 : index
      %63 = vector.load %arg12[%c0_46, %c0_47] : memref<16x1xf32, #tpu.memory_space<vmem>>, vector<16x1xf32>
      tpu.vector_store %arg12[%c0_46, %c0_47], %62 {strides = array<i32>} : memref<16x1xf32, #tpu.memory_space<vmem>>, vector<16x1xf32>,
      %cst_48 = arith.constant 0.000000e+00 : f32
      %64 = vector.broadcast %cst_48 : f32 to vector<16x1xf32>
      %c0_49 = arith.constant 0 : index
      %c0_50 = arith.constant 0 : index
      %65 = vector.load %arg13[%c0_49, %c0_50] : memref<16x1xf32, #tpu.memory_space<vmem>>, vector<16x1xf32>
      tpu.vector_store %arg13[%c0_49, %c0_50], %64 {strides = array<i32>} : memref<16x1xf32, #tpu.memory_space<vmem>>, vector<16x1xf32>,
      %cst_51 = arith.constant 0.000000e+00 : f32
      %66 = vector.broadcast %cst_51 : f32 to vector<16x1xf32>
      %c0_52 = arith.constant 0 : index
      %c0_53 = arith.constant 0 : index
      %67 = vector.load %arg14[%c0_52, %c0_53] : memref<16x1xf32, #tpu.memory_space<vmem>>, vector<16x1xf32>
      tpu.vector_store %arg14[%c0_52, %c0_53], %66 {strides = array<i32>} : memref<16x1xf32, #tpu.memory_space<vmem>>, vector<16x1xf32>,
    } else {
    }
    %c0 = arith.constant 0 : index
    %c0_4 = arith.constant 0 : index
    %8 = vector.load %arg11[%c0, %c0_4] : memref<16x32xbf16, #tpu.memory_space<vmem>>, vector<16x32xbf16>
    %c0_5 = arith.constant 0 : index
    %c0_6 = arith.constant 0 : index
    %9 = vector.load %arg9[%c0_5, %c0_6] : memref<32x128xbf16, #tpu.memory_space<vmem>>, vector<32x128xbf16>
    %cst_7 = arith.constant dense<0.000000e+00> : vector<16x128xf32>
    %10 = tpu.matmul %8, %9, %cst_7 {dimension_numbers = #tpu.dot_dimension_numbers<[1], [0], [0], [1], [0, 0, 1, 1], [], []>} : vector<16x32xbf16>, vector<32x128xbf16>, vector<16x128xf32> -> vector<16x128xf32>
    %c128_i32 = arith.constant 128 : i32
    %11 = arith.muli %arg2, %c128_i32 : i32
    %12 = tpu.iota {dimensions = array<i32: 1>} : vector<16x128xi32>
    %13 = vector.broadcast %11 : i32 to vector<16x128xi32>
    %14 = arith.addi %13, %12 : vector<16x128xi32>
    %c0_8 = arith.constant 0 : index
    %c0_9 = arith.constant 0 : index
    %15 = vector.load %arg4[%c0_8, %c0_9] : memref<16x1xi32, #tpu.memory_space<vmem>>, vector<16x1xi32>
    %c0_10 = arith.constant 0 : index
    %c0_11 = arith.constant 0 : index
    %16 = vector.load %arg14[%c0_10, %c0_11] : memref<16x1xf32, #tpu.memory_space<vmem>>, vector<16x1xf32>
    %17 = vector.broadcast %15 : vector<16x1xi32> to vector<16x128xi32>
    %18 = arith.cmpi eq, %14, %17 : vector<16x128xi32>
    %cst_12 = arith.constant 0.000000e+00 : f32
    %19 = vector.broadcast %cst_12 : f32 to vector<16x128xf32>
    %20 = arith.select %18, %10, %19 : vector<16x128xi1>, vector<16x128xf32>
    %cst_13 = arith.constant dense<0.000000e+00> : vector<16xf32>
    %21 = vector.multi_reduction <add>, %20, %cst_13 [1] : vector<16x128xf32> to vector<16xf32>
    %22 = vector.shape_cast %21 : vector<16xf32> to vector<16x1xf32>
    %23 = arith.addf %16, %22 : vector<16x1xf32>
    %c0_14 = arith.constant 0 : index
    %c0_15 = arith.constant 0 : index
    %24 = vector.load %arg14[%c0_14, %c0_15] : memref<16x1xf32, #tpu.memory_space<vmem>>, vector<16x1xf32>
    tpu.vector_store %arg14[%c0_14, %c0_15], %23 {strides = array<i32>} : memref<16x1xf32, #tpu.memory_space<vmem>>, vector<16x1xf32>,
    %c0_16 = arith.constant 0 : index
    %c0_17 = arith.constant 0 : index
    %25 = vector.load %arg12[%c0_16, %c0_17] : memref<16x1xf32, #tpu.memory_space<vmem>>, vector<16x1xf32>
    %cst_18 = arith.constant dense<0xFF800000> : vector<16xf32>
    %26 = vector.multi_reduction <maximumf>, %10, %cst_18 [1] : vector<16x128xf32> to vector<16xf32>
    %27 = vector.shape_cast %26 : vector<16xf32> to vector<16x1xf32>
    %28 = arith.maximumf %25, %27 : vector<16x1xf32>
    %29 = arith.subf %25, %28 : vector<16x1xf32>
    %30 = math.exp %29 : vector<16x1xf32>
    %c0_19 = arith.constant 0 : index
    %c0_20 = arith.constant 0 : index
    %31 = vector.load %arg13[%c0_19, %c0_20] : memref<16x1xf32, #tpu.memory_space<vmem>>, vector<16x1xf32>
    %32 = arith.mulf %30, %31 : vector<16x1xf32>
    %33 = vector.broadcast %28 : vector<16x1xf32> to vector<16x128xf32>
    %34 = arith.subf %10, %33 : vector<16x128xf32>
    %35 = math.exp %34 : vector<16x128xf32>
    %cst_21 = arith.constant dense<0.000000e+00> : vector<16xf32>
    %36 = vector.multi_reduction <add>, %35, %cst_21 [1] : vector<16x128xf32> to vector<16xf32>
    %37 = vector.shape_cast %36 : vector<16xf32> to vector<16x1xf32>
    %38 = arith.addf %32, %37 : vector<16x1xf32>
    %c0_22 = arith.constant 0 : index
    %c0_23 = arith.constant 0 : index
    %39 = vector.load %arg13[%c0_22, %c0_23] : memref<16x1xf32, #tpu.memory_space<vmem>>, vector<16x1xf32>
    tpu.vector_store %arg13[%c0_22, %c0_23], %38 {strides = array<i32>} : memref<16x1xf32, #tpu.memory_space<vmem>>, vector<16x1xf32>,
    %c0_24 = arith.constant 0 : index
    %c0_25 = arith.constant 0 : index
    %40 = vector.load %arg12[%c0_24, %c0_25] : memref<16x1xf32, #tpu.memory_space<vmem>>, vector<16x1xf32>
    tpu.vector_store %arg12[%c0_24, %c0_25], %28 {strides = array<i32>} : memref<16x1xf32, #tpu.memory_space<vmem>>, vector<16x1xf32>,
    %c0_i32_26 = arith.constant 0 : i32
    %41 = arith.cmpi eq, %arg2, %c0_i32_26 : i32
    %42 = arith.extui %41 : i1 to i32
    %c0_i32_27 = arith.constant 0 : i32
    %43 = arith.cmpi ne, %42, %c0_i32_27 : i32
    scf.if %43 {
      %c0_28 = arith.constant 0 : index
      %c0_29 = arith.constant 0 : index
      %44 = vector.load %arg12[%c0_28, %c0_29] : memref<16x1xf32, #tpu.memory_space<vmem>>, vector<16x1xf32>
      %c0_30 = arith.constant 0 : index
      %c0_31 = arith.constant 0 : index
      %45 = vector.load %arg13[%c0_30, %c0_31] : memref<16x1xf32, #tpu.memory_space<vmem>>, vector<16x1xf32>
      %46 = math.log %45 : vector<16x1xf32>
      %47 = arith.addf %44, %46 : vector<16x1xf32>
      %c0_32 = arith.constant 0 : index
      %c0_33 = arith.constant 0 : index
      %48 = vector.load %arg14[%c0_32, %c0_33] : memref<16x1xf32, #tpu.memory_space<vmem>>, vector<16x1xf32>
      %49 = arith.subf %47, %48 : vector<16x1xf32>
      %c1_i32 = arith.constant 1 : i32
      %50 = arith.muli %arg0, %c1_i32 : i32
      %51 = arith.addi %50, %arg1 : i32
      %c16_i32 = arith.constant 16 : i32
      %52 = arith.muli %51, %c16_i32 : i32
      %53 = tpu.iota {dimensions = array<i32: 0>} : vector<16x1xi32>
      %54 = vector.broadcast %52 : i32 to vector<16x1xi32>
      %55 = arith.addi %54, %53 : vector<16x1xi32>
      %c16_i32_34 = arith.constant 16 : i32
      %56 = vector.broadcast %c16_i32_34 : i32 to vector<16x1xi32>
      %57 = arith.cmpi slt, %55, %56 : vector<16x1xi32>
      %cst_35 = arith.constant 0.000000e+00 : f32
      %58 = vector.broadcast %cst_35 : f32 to vector<16x1xf32>
      %59 = arith.select %57, %49, %58 : vector<16x1xi1>, vector<16x1xf32>
      %c0_36 = arith.constant 0 : index
      %c0_37 = arith.constant 0 : index
      %60 = vector.load %arg15[%c0_36, %c0_37] : memref<1x1xf32, #tpu.memory_space<vmem>>, vector<1x1xf32>
      %cst_38 = arith.constant dense<0.000000e+00> : vector<1xf32>
      %61 = vector.multi_reduction <add>, %59, %cst_38 [0] : vector<16x1xf32> to vector<1xf32>
      %62 = vector.shape_cast %61 : vector<1xf32> to vector<1x1xf32>
      %63 = arith.addf %60, %62 : vector<1x1xf32>
      %c0_39 = arith.constant 0 : index
      %c0_40 = arith.constant 0 : index
      %64 = vector.load %arg15[%c0_39, %c0_40] : memref<1x1xf32, #tpu.memory_space<vmem>>, vector<1x1xf32>
      tpu.vector_store %arg15[%c0_39, %c0_40], %63 {strides = array<i32>} : memref<1x1xf32, #tpu.memory_space<vmem>>, vector<1x1xf32>,
      %c0_i32_41 = arith.constant 0 : i32
      %65 = arith.cmpi eq, %arg1, %c0_i32_41 : i32
      %66 = arith.extui %65 : i1 to i32
      %c0_i32_42 = arith.constant 0 : i32
      %67 = arith.cmpi ne, %66, %c0_i32_42 : i32
      scf.if %67 {
        %c0_43 = arith.constant 0 : index
        %c0_44 = arith.constant 0 : index
        %68 = vector.load %arg15[%c0_43, %c0_44] : memref<1x1xf32, #tpu.memory_space<vmem>>, vector<1x1xf32>
        %69 = vector.shape_cast %68 : vector<1x1xf32> to vector<1x1x1xf32>
        %70 = vector.broadcast %69 : vector<1x1x1xf32> to vector<1x8x128xf32>
        %c0_45 = arith.constant 0 : index
        %c0_46 = arith.constant 0 : index
        %c0_47 = arith.constant 0 : index
        %71 = vector.load %arg10[%c0_45, %c0_46, %c0_47] : memref<1x8x128xf32, #tpu.memory_space<vmem>>, vector<1x8x128xf32>
        tpu.vector_store %arg10[%c0_45, %c0_46, %c0_47], %70 {strides = array<i32>} : memref<1x8x128xf32, #tpu.memory_space<vmem>>, vector<1x8x128xf32>,
      } else {
      }
    } else {
    }
    return
  }
  func.func @transform_0(%arg0: i32, %arg1: i32, %arg2: i32) -> (i32, i32) {
    %c1_i32 = arith.constant 1 : i32
    %0 = arith.muli %arg0, %c1_i32 : i32
    %1 = arith.addi %0, %arg1 : i32
    %c0_i32 = arith.constant 0 : i32
    %c0_i32_0 = arith.constant 0 : i32
    return %1, %c0_i32 : i32, i32
  }
  func.func @transform_1(%arg0: i32, %arg1: i32, %arg2: i32) -> (i32, i32) {
    %c1_i32 = arith.constant 1 : i32
    %0 = arith.muli %arg0, %c1_i32 : i32
    %1 = arith.addi %0, %arg1 : i32
    %c0_i32 = arith.constant 0 : i32
    %c0_i32_0 = arith.constant 0 : i32
    return %1, %c0_i32 : i32, i32
  }
  func.func @transform_2(%arg0: i32, %arg1: i32, %arg2: i32) -> (i32, i32) {
    %c0_i32 = arith.constant 0 : i32
    %c0_i32_0 = arith.constant 0 : i32
    %c0_i32_1 = arith.constant 0 : i32
    return %c0_i32, %c0_i32_0 : i32, i32
  }
  func.func @transform_3(%arg0: i32, %arg1: i32, %arg2: i32) -> (i32, i32) {
    %c0_i32 = arith.constant 0 : i32
    %c0_i32_0 = arith.constant 0 : i32
    %c0_i32_1 = arith.constant 0 : i32
    return %c0_i32, %c0_i32_0 : i32, i32
  }
  func.func @transform_4(%arg0: i32, %arg1: i32, %arg2: i32) -> (i32, i32) {
    %c0_i32 = arith.constant 0 : i32
    %c0_i32_0 = arith.constant 0 : i32
    %c0_i32_1 = arith.constant 0 : i32
    return %c0_i32, %c0_i32_0 : i32, i32
  }
  func.func @transform_5(%arg0: i32, %arg1: i32, %arg2: i32) -> (i32, i32) {
    %c0_i32 = arith.constant 0 : i32
    %c0_i32_0 = arith.constant 0 : i32
    %c0_i32_1 = arith.constant 0 : i32
    return %c0_i32, %c0_i32_0 : i32, i32
  }
  func.func @transform_6(%arg0: i32, %arg1: i32, %arg2: i32) -> (i32, i32) {
    %c0_i32 = arith.constant 0 : i32
    %c0_i32_0 = arith.constant 0 : i32
    return %c0_i32, %arg2 : i32, i32
  }
  func.func @transform_7(%arg0: i32, %arg1: i32, %arg2: i32) -> (i32, i32, i32) {
    %c0_i32 = arith.constant 0 : i32
    %c0_i32_0 = arith.constant 0 : i32
    %c0_i32_1 = arith.constant 0 : i32
    return %arg0, %c0_i32, %c0_i32_0 : i32, i32, i32
  }
}

module attributes {stable_mosaic.version = 11 : i64} {
  func.func @_fused_loss_kernel(%arg0: i32, %arg1: i32, %arg2: i32, %arg3: memref<16x32xbf16, #tpu.memory_space<vmem>>, %arg4: memref<16x1xi32, #tpu.memory_space<vmem>>, %arg5: memref<32x64xbf16, #tpu.memory_space<vmem>>, %arg6: memref<64x32xbf16, #tpu.memory_space<vmem>>, %arg7: memref<32x64xbf16, #tpu.memory_space<vmem>>, %arg8: memref<64x32xbf16, #tpu.memory_space<vmem>>, %arg9: memref<32x128xbf16, #tpu.memory_space<vmem>>, %arg10: memref<1x8x128xf32, #tpu.memory_space<vmem>>, %arg11: memref<16x32xbf16, #tpu.memory_space<vmem>>, %arg12: memref<16x1xf32, #tpu.memory_space<vmem>>, %arg13: memref<16x1xf32, #tpu.memory_space<vmem>>, %arg14: memref<16x1xf32, #tpu.memory_space<vmem>>, %arg15: memref<1x1xf32, #tpu.memory_space<vmem>>) attributes {dimension_semantics = [#tpu.dimension_semantics<parallel>, #tpu.dimension_semantics<arbitrary>, #tpu.dimension_semantics<arbitrary>], iteration_bounds = array<i64: 2, 1, 1>, scalar_prefetch = 0 : i64, scratch_operands = 5 : i64, tpu.core_type = #tpu.core_type<tc>, window_params = [{transform_indices = @transform_0, window_bounds = array<i64: 16, 32>}, {transform_indices = @transform_1, window_bounds = array<i64: 16, 1>}, {pipeline_mode = #tpu.pipeline_mode<synchronous>, transform_indices = @transform_2, window_bounds = array<i64: 32, 64>}, {pipeline_mode = #tpu.pipeline_mode<synchronous>, transform_indices = @transform_3, window_bounds = array<i64: 64, 32>}, {pipeline_mode = #tpu.pipeline_mode<synchronous>, transform_indices = @transform_4, window_bounds = array<i64: 32, 64>}, {pipeline_mode = #tpu.pipeline_mode<synchronous>, transform_indices = @transform_5, window_bounds = array<i64: 64, 32>}, {transform_indices = @transform_6, window_bounds = array<i64: 32, 128>}, {transform_indices = @transform_7, window_bounds = array<i64: 1, 8, 128>}]} {
    %c0_i32 = arith.constant 0 : i32
    %0 = arith.cmpi eq, %arg1, %c0_i32 : i32
    %c0_i32_0 = arith.constant 0 : i32
    %1 = arith.cmpi eq, %arg2, %c0_i32_0 : i32
    %2 = arith.andi %0, %1 : i1
    %3 = arith.extui %2 : i1 to i32
    %c0_i32_1 = arith.constant 0 : i32
    %4 = arith.cmpi ne, %3, %c0_i32_1 : i32
    scf.if %4 {
      %cst_28 = arith.constant 0.000000e+00 : f32
      %44 = vector.broadcast %cst_28 : f32 to vector<1x1xf32>
      %c0_29 = arith.constant 0 : index
      %c0_30 = arith.constant 0 : index
      %45 = vector.load %arg15[%c0_29, %c0_30] : memref<1x1xf32, #tpu.memory_space<vmem>>, vector<1x1xf32>
      tpu.vector_store %arg15[%c0_29, %c0_30], %44 {strides = array<i32>} : memref<1x1xf32, #tpu.memory_space<vmem>>, vector<1x1xf32>,
    } else {
    }
    %c0_i32_2 = arith.constant 0 : i32
    %5 = arith.cmpi eq, %arg2, %c0_i32_2 : i32
    %6 = arith.extui %5 : i1 to i32
    %cst = arith.constant -1.000000e+30 : f32
    %c0_i32_3 = arith.constant 0 : i32
    %7 = arith.cmpi ne, %6, %c0_i32_3 : i32
    scf.if %7 {
      %c0_28 = arith.constant 0 : index
      %c0_29 = arith.constant 0 : index
      %44 = vector.load %arg3[%c0_28, %c0_29] : memref<16x32xbf16, #tpu.memory_space<vmem>>, vector<16x32xbf16>
      %c0_30 = arith.constant 0 : index
      %c0_31 = arith.constant 0 : index
      %45 = vector.load %arg5[%c0_30, %c0_31] : memref<32x64xbf16, #tpu.memory_space<vmem>>, vector<32x64xbf16>
      %cst_32 = arith.constant dense<0.000000e+00> : vector<16x64xf32>
      %46 = tpu.matmul %44, %45, %cst_32 {dimension_numbers = #tpu.dot_dimension_numbers<[1], [0], [0], [1], [0, 0, 1, 1], [], []>} : vector<16x32xbf16>, vector<32x64xbf16>, vector<16x64xf32> -> vector<16x64xf32>
      %cst_33 = arith.constant 0.000000e+00 : f32
      %47 = vector.broadcast %cst_33 : f32 to vector<16x64xf32>
      %48 = arith.maximumf %46, %47 : vector<16x64xf32>
      %49 = arith.truncf %48 : vector<16x64xf32> to vector<16x64xbf16>
      %c0_34 = arith.constant 0 : index
      %c0_35 = arith.constant 0 : index
      %50 = vector.load %arg6[%c0_34, %c0_35] : memref<64x32xbf16, #tpu.memory_space<vmem>>, vector<64x32xbf16>
      %cst_36 = arith.constant dense<0.000000e+00> : vector<16x32xf32>
      %51 = tpu.matmul %49, %50, %cst_36 {dimension_numbers = #tpu.dot_dimension_numbers<[1], [0], [0], [1], [0, 0, 1, 1], [], []>} : vector<16x64xbf16>, vector<64x32xbf16>, vector<16x32xf32> -> vector<16x32xf32>
      %52 = arith.truncf %51 : vector<16x32xf32> to vector<16x32xbf16>
      %c0_37 = arith.constant 0 : index
      %c0_38 = arith.constant 0 : index
      %53 = vector.load %arg7[%c0_37, %c0_38] : memref<32x64xbf16, #tpu.memory_space<vmem>>, vector<32x64xbf16>
      %cst_39 = arith.constant dense<0.000000e+00> : vector<16x64xf32>
      %54 = tpu.matmul %52, %53, %cst_39 {dimension_numbers = #tpu.dot_dimension_numbers<[1], [0], [0], [1], [0, 0, 1, 1], [], []>} : vector<16x32xbf16>, vector<32x64xbf16>, vector<16x64xf32> -> vector<16x64xf32>
      %cst_40 = arith.constant 0.000000e+00 : f32
      %55 = vector.broadcast %cst_40 : f32 to vector<16x64xf32>
      %56 = arith.maximumf %54, %55 : vector<16x64xf32>
      %57 = arith.truncf %56 : vector<16x64xf32> to vector<16x64xbf16>
      %c0_41 = arith.constant 0 : index
      %c0_42 = arith.constant 0 : index
      %58 = vector.load %arg8[%c0_41, %c0_42] : memref<64x32xbf16, #tpu.memory_space<vmem>>, vector<64x32xbf16>
      %cst_43 = arith.constant dense<0.000000e+00> : vector<16x32xf32>
      %59 = tpu.matmul %57, %58, %cst_43 {dimension_numbers = #tpu.dot_dimension_numbers<[1], [0], [0], [1], [0, 0, 1, 1], [], []>} : vector<16x64xbf16>, vector<64x32xbf16>, vector<16x32xf32> -> vector<16x32xf32>
      %60 = arith.truncf %59 : vector<16x32xf32> to vector<16x32xbf16>
      %c0_44 = arith.constant 0 : index
      %c0_45 = arith.constant 0 : index
      %61 = vector.load %arg11[%c0_44, %c0_45] : memref<16x32xbf16, #tpu.memory_space<vmem>>, vector<16x32xbf16>
      tpu.vector_store %arg11[%c0_44, %c0_45], %60 {strides = array<i32>} : memref<16x32xbf16, #tpu.memory_space<vmem>>, vector<16x32xbf16>,
      %62 = vector.broadcast %cst : f32 to vector<16x1xf32>
      %c0_46 = arith.constant 0 : index
      %c0_47 = arith.constant 0 : index
      %63 = vector.load %arg12[%c0_46, %c0_47] : memref<16x1xf32, #tpu.memory_space<vmem>>, vector<16x1xf32>
      tpu.vector_store %arg12[%c0_46, %c0_47], %62 {strides = array<i32>} : memref<16x1xf32, #tpu.memory_space<vmem>>, vector<16x1xf32>,
      %cst_48 = arith.constant 0.000000e+00 : f32
      %64 = vector.broadcast %cst_48 : f32 to vector<16x1xf32>
      %c0_49 = arith.constant 0 : index
      %c0_50 = arith.constant 0 : index
      %65 = vector.load %arg13[%c0_49, %c0_50] : memref<16x1xf32, #tpu.memory_space<vmem>>, vector<16x1xf32>
      tpu.vector_store %arg13[%c0_49, %c0_50], %64 {strides = array<i32>} : memref<16x1xf32, #tpu.memory_space<vmem>>, vector<16x1xf32>,
      %cst_51 = arith.constant 0.000000e+00 : f32
      %66 = vector.broadcast %cst_51 : f32 to vector<16x1xf32>
      %c0_52 = arith.constant 0 : index
      %c0_53 = arith.constant 0 : index
      %67 = vector.load %arg14[%c0_52, %c0_53] : memref<16x1xf32, #tpu.memory_space<vmem>>, vector<16x1xf32>
      tpu.vector_store %arg14[%c0_52, %c0_53], %66 {strides = array<i32>} : memref<16x1xf32, #tpu.memory_space<vmem>>, vector<16x1xf32>,
    } else {
    }
    %c0 = arith.constant 0 : index
    %c0_4 = arith.constant 0 : index
    %8 = vector.load %arg11[%c0, %c0_4] : memref<16x32xbf16, #tpu.memory_space<vmem>>, vector<16x32xbf16>
    %c0_5 = arith.constant 0 : index
    %c0_6 = arith.constant 0 : index
    %9 = vector.load %arg9[%c0_5, %c0_6] : memref<32x128xbf16, #tpu.memory_space<vmem>>, vector<32x128xbf16>
    %cst_7 = arith.constant dense<0.000000e+00> : vector<16x128xf32>
    %10 = tpu.matmul %8, %9, %cst_7 {dimension_numbers = #tpu.dot_dimension_numbers<[1], [0], [0], [1], [0, 0, 1, 1], [], []>} : vector<16x32xbf16>, vector<32x128xbf16>, vector<16x128xf32> -> vector<16x128xf32>
    %c128_i32 = arith.constant 128 : i32
    %11 = arith.muli %arg2, %c128_i32 : i32
    %12 = tpu.iota {dimensions = array<i32: 1>} : vector<16x128xi32>
    %13 = vector.broadcast %11 : i32 to vector<16x128xi32>
    %14 = arith.addi %13, %12 : vector<16x128xi32>
    %c0_8 = arith.constant 0 : index
    %c0_9 = arith.constant 0 : index
    %15 = vector.load %arg4[%c0_8, %c0_9] : memref<16x1xi32, #tpu.memory_space<vmem>>, vector<16x1xi32>
    %c0_10 = arith.constant 0 : index
    %c0_11 = arith.constant 0 : index
    %16 = vector.load %arg14[%c0_10, %c0_11] : memref<16x1xf32, #tpu.memory_space<vmem>>, vector<16x1xf32>
    %17 = vector.broadcast %15 : vector<16x1xi32> to vector<16x128xi32>
    %18 = arith.cmpi eq, %14, %17 : vector<16x128xi32>
    %cst_12 = arith.constant 0.000000e+00 : f32
    %19 = vector.broadcast %cst_12 : f32 to vector<16x128xf32>
    %20 = arith.select %18, %10, %19 : vector<16x128xi1>, vector<16x128xf32>
    %cst_13 = arith.constant dense<0.000000e+00> : vector<16xf32>
    %21 = vector.multi_reduction <add>, %20, %cst_13 [1] : vector<16x128xf32> to vector<16xf32>
    %22 = vector.shape_cast %21 : vector<16xf32> to vector<16x1xf32>
    %23 = arith.addf %16, %22 : vector<16x1xf32>
    %c0_14 = arith.constant 0 : index
    %c0_15 = arith.constant 0 : index
    %24 = vector.load %arg14[%c0_14, %c0_15] : memref<16x1xf32, #tpu.memory_space<vmem>>, vector<16x1xf32>
    tpu.vector_store %arg14[%c0_14, %c0_15], %23 {strides = array<i32>} : memref<16x1xf32, #tpu.memory_space<vmem>>, vector<16x1xf32>,
    %c0_16 = arith.constant 0 : index
    %c0_17 = arith.constant 0 : index
    %25 = vector.load %arg12[%c0_16, %c0_17] : memref<16x1xf32, #tpu.memory_space<vmem>>, vector<16x1xf32>
    %cst_18 = arith.constant dense<0xFF800000> : vector<16xf32>
    %26 = vector.multi_reduction <maximumf>, %10, %cst_18 [1] : vector<16x128xf32> to vector<16xf32>
    %27 = vector.shape_cast %26 : vector<16xf32> to vector<16x1xf32>
    %28 = arith.maximumf %25, %27 : vector<16x1xf32>
    %29 = arith.subf %25, %28 : vector<16x1xf32>
    %30 = math.exp %29 : vector<16x1xf32>
    %c0_19 = arith.constant 0 : index
    %c0_20 = arith.constant 0 : index
    %31 = vector.load %arg13[%c0_19, %c0_20] : memref<16x1xf32, #tpu.memory_space<vmem>>, vector<16x1xf32>
    %32 = arith.mulf %30, %31 : vector<16x1xf32>
    %33 = vector.broadcast %28 : vector<16x1xf32> to vector<16x128xf32>
    %34 = arith.subf %10, %33 : vector<16x128xf32>
    %35 = math.exp %34 : vector<16x128xf32>
    %cst_21 = arith.constant dense<0.000000e+00> : vector<16xf32>
    %36 = vector.multi_reduction <add>, %35, %cst_21 [1] : vector<16x128xf32> to vector<16xf32>
    %37 = vector.shape_cast %36 : vector<16xf32> to vector<16x1xf32>
    %38 = arith.addf %32, %37 : vector<16x1xf32>
    %c0_22 = arith.constant 0 : index
    %c0_23 = arith.constant 0 : index
    %39 = vector.load %arg13[%c0_22, %c0_23] : memref<16x1xf32, #tpu.memory_space<vmem>>, vector<16x1xf32>
    tpu.vector_store %arg13[%c0_22, %c0_23], %38 {strides = array<i32>} : memref<16x1xf32, #tpu.memory_space<vmem>>, vector<16x1xf32>,
    %c0_24 = arith.constant 0 : index
    %c0_25 = arith.constant 0 : index
    %40 = vector.load %arg12[%c0_24, %c0_25] : memref<16x1xf32, #tpu.memory_space<vmem>>, vector<16x1xf32>
    tpu.vector_store %arg12[%c0_24, %c0_25], %28 {strides = array<i32>} : memref<16x1xf32, #tpu.memory_space<vmem>>, vector<16x1xf32>,
    %c0_i32_26 = arith.constant 0 : i32
    %41 = arith.cmpi eq, %arg2, %c0_i32_26 : i32
    %42 = arith.extui %41 : i1 to i32
    %c0_i32_27 = arith.constant 0 : i32
    %43 = arith.cmpi ne, %42, %c0_i32_27 : i32
    scf.if %43 {
      %c0_28 = arith.constant 0 : index
      %c0_29 = arith.constant 0 : index
      %44 = vector.load %arg12[%c0_28, %c0_29] : memref<16x1xf32, #tpu.memory_space<vmem>>, vector<16x1xf32>
      %c0_30 = arith.constant 0 : index
      %c0_31 = arith.constant 0 : index
      %45 = vector.load %arg13[%c0_30, %c0_31] : memref<16x1xf32, #tpu.memory_space<vmem>>, vector<16x1xf32>
      %46 = math.log %45 : vector<16x1xf32>
      %47 = arith.addf %44, %46 : vector<16x1xf32>
      %c0_32 = arith.constant 0 : index
      %c0_33 = arith.constant 0 : index
      %48 = vector.load %arg14[%c0_32, %c0_33] : memref<16x1xf32, #tpu.memory_space<vmem>>, vector<16x1xf32>
      %49 = arith.subf %47, %48 : vector<16x1xf32>
      %c1_i32 = arith.constant 1 : i32
      %50 = arith.muli %arg0, %c1_i32 : i32
      %51 = arith.addi %50, %arg1 : i32
      %c16_i32 = arith.constant 16 : i32
      %52 = arith.muli %51, %c16_i32 : i32
      %53 = tpu.iota {dimensions = array<i32: 0>} : vector<16x1xi32>
      %54 = vector.broadcast %52 : i32 to vector<16x1xi32>
      %55 = arith.addi %54, %53 : vector<16x1xi32>
      %c16_i32_34 = arith.constant 16 : i32
      %56 = vector.broadcast %c16_i32_34 : i32 to vector<16x1xi32>
      %57 = arith.cmpi slt, %55, %56 : vector<16x1xi32>
      %cst_35 = arith.constant 0.000000e+00 : f32
      %58 = vector.broadcast %cst_35 : f32 to vector<16x1xf32>
      %59 = arith.select %57, %49, %58 : vector<16x1xi1>, vector<16x1xf32>
      %c0_36 = arith.constant 0 : index
      %c0_37 = arith.constant 0 : index
      %60 = vector.load %arg15[%c0_36, %c0_37] : memref<1x1xf32, #tpu.memory_space<vmem>>, vector<1x1xf32>
      %cst_38 = arith.constant dense<0.000000e+00> : vector<1xf32>
      %61 = vector.multi_reduction <add>, %59, %cst_38 [0] : vector<16x1xf32> to vector<1xf32>
      %62 = vector.shape_cast %61 : vector<1xf32> to vector<1x1xf32>
      %63 = arith.addf %60, %62 : vector<1x1xf32>
      %c0_39 = arith.constant 0 : index
      %c0_40 = arith.constant 0 : index
      %64 = vector.load %arg15[%c0_39, %c0_40] : memref<1x1xf32, #tpu.memory_space<vmem>>, vector<1x1xf32>
      tpu.vector_store %arg15[%c0_39, %c0_40], %63 {strides = array<i32>} : memref<1x1xf32, #tpu.memory_space<vmem>>, vector<1x1xf32>,
      %c0_i32_41 = arith.constant 0 : i32
      %65 = arith.cmpi eq, %arg1, %c0_i32_41 : i32
      %66 = arith.extui %65 : i1 to i32
      %c0_i32_42 = arith.constant 0 : i32
      %67 = arith.cmpi ne, %66, %c0_i32_42 : i32
      scf.if %67 {
        %c0_43 = arith.constant 0 : index
        %c0_44 = arith.constant 0 : index
        %68 = vector.load %arg15[%c0_43, %c0_44] : memref<1x1xf32, #tpu.memory_space<vmem>>, vector<1x1xf32>
        %69 = vector.shape_cast %68 : vector<1x1xf32> to vector<1x1x1xf32>
        %70 = vector.broadcast %69 : vector<1x1x1xf32> to vector<1x8x128xf32>
        %c0_45 = arith.constant 0 : index
        %c0_46 = arith.constant 0 : index
        %c0_47 = arith.constant 0 : index
        %71 = vector.load %arg10[%c0_45, %c0_46, %c0_47] : memref<1x8x128xf32, #tpu.memory_space<vmem>>, vector<1x8x128xf32>
        tpu.vector_store %arg10[%c0_45, %c0_46, %c0_47], %70 {strides = array<i32>} : memref<1x8x128xf32, #tpu.memory_space<vmem>>, vector<1x8x128xf32>,
      } else {
      }
    } else {
    }
    return
  }
  func.func @transform_0(%arg0: i32, %arg1: i32, %arg2: i32) -> (i32, i32) {
    %c1_i32 = arith.constant 1 : i32
    %0 = arith.muli %arg0, %c1_i32 : i32
    %1 = arith.addi %0, %arg1 : i32
    %c0_i32 = arith.constant 0 : i32
    %c0_i32_0 = arith.constant 0 : i32
    return %1, %c0_i32 : i32, i32
  }
  func.func @transform_1(%arg0: i32, %arg1: i32, %arg2: i32) -> (i32, i32) {
    %c1_i32 = arith.constant 1 : i32
    %0 = arith.muli %arg0, %c1_i32 : i32
    %1 = arith.addi %0, %arg1 : i32
    %c0_i32 = arith.constant 0 : i32
    %c0_i32_0 = arith.constant 0 : i32
    return %1, %c0_i32 : i32, i32
  }
  func.func @transform_2(%arg0: i32, %arg1: i32, %arg2: i32) -> (i32, i32) {
    %c0_i32 = arith.constant 0 : i32
    %c0_i32_0 = arith.constant 0 : i32
    %c0_i32_1 = arith.constant 0 : i32
    return %c0_i32, %c0_i32_0 : i32, i32
  }
  func.func @transform_3(%arg0: i32, %arg1: i32, %arg2: i32) -> (i32, i32) {
    %c0_i32 = arith.constant 0 : i32
    %c0_i32_0 = arith.constant 0 : i32
    %c0_i32_1 = arith.constant 0 : i32
    return %c0_i32, %c0_i32_0 : i32, i32
  }
  func.func @transform_4(%arg0: i32, %arg1: i32, %arg2: i32) -> (i32, i32) {
    %c0_i32 = arith.constant 0 : i32
    %c0_i32_0 = arith.constant 0 : i32
    %c0_i32_1 = arith.constant 0 : i32
    return %c0_i32, %c0_i32_0 : i32, i32
  }
  func.func @transform_5(%arg0: i32, %arg1: i32, %arg2: i32) -> (i32, i32) {
    %c0_i32 = arith.constant 0 : i32
    %c0_i32_0 = arith.constant 0 : i32
    %c0_i32_1 = arith.constant 0 : i32
    return %c0_i32, %c0_i32_0 : i32, i32
  }
  func.func @transform_6(%arg0: i32, %arg1: i32, %arg2: i32) -> (i32, i32) {
    %c0_i32 = arith.constant 0 : i32
    %c0_i32_0 = arith.constant 0 : i32
    return %c0_i32, %arg2 : i32, i32
  }
  func.func @transform_7(%arg0: i32, %arg1: i32, %arg2: i32) -> (i32, i32, i32) {
    %c0_i32 = arith.constant 0 : i32
    %c0_i32_0 = arith.constant 0 : i32
    %c0_i32_1 = arith.constant 0 : i32
    return %arg0, %c0_i32, %c0_i32_0 : i32, i32, i32
  }
}

</mosaic_0001>

<bundles_post_ra>
// kernel: tpu_custom_call.1
= control target key start
LH: loop header
LB: loop body
LE: loop exit
PB: predicated region body
PF: predicated region fallthrough
CT: control target
= control target key end

     0   :  { %12 = vsyncpa [#allocation8], 0  ;;  %s1301_s0 = inlined_call_operand.vmem [shape: bf16[32,32], index: 0, kind: input, shape index: {}]   ;;  %s1302_s1 = inlined_call_operand.vmem [shape: s32[32,1], index: 1, kind: input, shape index: {}]   ;;  %s1303_s2 = inlined_call_operand.vmem [shape: bf16[32,64], index: 2, kind: input, shape index: {}]   ;;  %s1304_s3 = inlined_call_operand.vmem [shape: bf16[64,32], index: 3, kind: input, shape index: {}]   ;;  %s1305_s4 = inlined_call_operand.vmem [shape: bf16[32,64], index: 4, kind: input, shape index: {}]   ;;  %s1306_s5 = inlined_call_operand.vmem [shape: bf16[64,32], index: 5, kind: input, shape index: {}]   ;;  %s1307_s6 = inlined_call_operand.vmem [shape: bf16[32,128], index: 6, kind: input, shape index: {}]   ;;  %s1308_s7 = inlined_call_operand.hbm [shape: f32[2,8,128], index: 7, kind: output, shape index: {}]  }
   0x1   :  { %14 = vsyncpa [#allocation8 + $0x1], 0  ;;  %s1132_s24 = smov 0   ;;  %s1134_s25 = smov 0  }
   0x2   :  { %s1136_s26 = smov 0   ;;  %s1138_s27 = smov 0  }
   0x3   :  { %s1140_s28 = smov 0   ;;  %s1142_s29 = smov 0  }
   0x4 LB: > { %s834_s30 = sadd.s32 4294967295, %s1087_s29   ;;  %s835_s8 = sadd.s32 4294967294, %s1087_s29   ;;  %s1087_s29 = sphi %s1142_s29, %s20_s29   ;;  %s1083_s28 = sphi %s1140_s28, %s1315_s28   ;;  %s1079_s27 = sphi %s1138_s27, %s1314_s27   ;;  %s1075_s26 = sphi %s1136_s26, %s1313_s26   ;;  %s1071_s25 = sphi %s1134_s25, %s1312_s25   ;;  %s1067_s24 = sphi %s1132_s24, %s1311_s24  }
   0x5   : > { %s39_s9 = sadd.s32 1, %s1083_s28  ;;  %s212_s10 = sadd.s32 1, %s1075_s26 }
   0x6   : > { %p41_p0 = scmp.ge.s32.totalorder %s39_s9, 2  ;;  %p222_p1 = scmp.ne.s32.totalorder %s1075_s26, %s1071_s25 }
   0x7   : > { %p223_p2 = scmp.eq.s32.totalorder %s834_s30, 1  ;;  %p228_p3 = scmp.ne.s32.totalorder %s1071_s25, %s1067_s24 }
   0x8   : > { %s1317_s9 = smov (%p41_p0, %s39_s9), 0  ;;  %p229_p5 = scmp.eq.s32.totalorder %s835_s8, 1 }
   0x9   : > { %p1172_p4 = por %p223_p2, %p222_p1  ;;  %s209_s12 = ssub.s32 %s1083_s28, %s1317_s9 }
   0xa   : > { %p839_p6 = scmp.ge.s32.totalorder %s1087_s29, 1  ;;  %p210_p7 = scmp.eq.s32.totalorder %s209_s12, 0 }
   0xb   : > { %p1179_p8 = por %p229_p5, %p228_p3  ;;  %p288_p9 = scmp.lt.s32.totalorder %s1087_s29, 3 }
   0xc   : > { %s1185_s14 = scalar_select %p210_p7, %s1075_s26, %s212_s10  }
   0xd   : > { %p289_p10 = pnand %p839_p6, %p288_p9 }
   0xe   : > { %s841_s17 = sshll.u32 (!%p289_p10), %s1079_s27, 1  ;;  %s328_s15 = sand.u32 (!%p289_p10), 1, %s1071_s25  }
   0xf   : > { %292 = sbr.rel (%p289_p10) target bundleno = 1257 (0x4e9), region = 48  ;;  %p333_p11 = scmp.lt.s32.totalorder (!%p289_p10), %s841_s17, 3 }
  0x10   : > { %s840_s16 = sshll.u32 (!%p289_p10), %s328_s15, 3  ;;  %s916_s18 = sshll.u32 (!%p289_p10), %s1079_s27, 3 }
  0x11   : > { %s732_s21 = scalar_lea.hbm (!%p289_p10), %s1308_s7, %s916_s18  ;;  %s1029_s19 = scalar_lea.hbm (!%p289_p10), %s1308_s7, 16 }
  0x14   : > { %v921_v0 = vld [vmem:[%s1303_s2 + $0x8] sm:$0xff]  ;;  %v925_v1 = vld [vmem:[%s1304_s3 + $0x18] sm:$0xff]  ;;  %v920_v2 = vld [vmem:[%s1303_s2] sm:$0xff]  ;;  %s1319_s17 = smov (!%p333_p11, %s841_s17), 3  ;;  %vm386_vm0 = vcmask 261120   ;;  %vm439_vm1 = vcmask 523264   ;;  %v597_v37 = vlaneseq }
  0x15   : > { %396 = vmatpush.bf16.msra.mxu0 %v921_v0  ;;  %447 = vmatpush.bf16.msra.mxu1 %v925_v1  ;;  %s842_s22 = sshll.u32 %s1319_s17, 2  ;;  %v924_v4 = vld [vmem:[%s1304_s3 + $0x10] sm:$0xff]  ;;  %v923_v5 = vld [vmem:[%s1304_s3 + $0x8] sm:$0xff]  ;;  %v922_v6 = vld [vmem:[%s1304_s3] sm:$0xff]  ;;  %s844_s30 = sshll.u32 %s1319_s17, 3  ;;  %v1089_v29 = vmov 0  }
  0x16   : > { %s336_s8 = scalar_lea.vmem %s1301_s0, %s842_s22  ;;  %v927_v12 = vld [vmem:[%s1305_s4 + $0x8] sm:$0xff]  ;;  %v926_v13 = vld [vmem:[%s1305_s4] sm:$0xff]  ;;  %v931_v14 = vld [vmem:[%s1306_s5 + $0x18] sm:$0xff]  ;;  %s344_s12 = scalar_lea.vmem %s1302_s1, %s844_s30  ;;  %994 = vset.pattern.permute.xlu2 %v1089_v29  ;;  %993 = vset.pattern.permute.xlu1 %v1089_v29  ;;  %vm545_vm2 = vcmask 257024   ;;  %vm548_vm3 = vcmask 7168   ;;  %v598_v38 = vand.u32 127, %v597_v37 }
  0x17   : > { %v919_v3 = vld [vmem:[%s336_s8] sm:$0xff]  ;;  %483 = vmatpush.bf16.msra.mxu2 %v927_v12  ;;  %533 = vmatpush.bf16.msra.mxu3 %v931_v14  ;;  %v930_v18 = vld [vmem:[%s1306_s5 + $0x10] sm:$0xff]  ;;  %v929_v19 = vld [vmem:[%s1306_s5 + $0x8] sm:$0xff]  ;;  %v1090_v36 = vmov -1e+30   ;;  %v1091_v43 = vmov 0.0  }
  0x18   : > { %v928_v20 = vld [vmem:[%s1306_s5] sm:$0xff]  ;;  %v934_v26 = vld [vmem:[%s1307_s6 + $0x8] sm:$0xff]  ;;  %995 = vset.pattern.permute.xlu0 %v1089_v29  ;;  %549 = vst.msk [vmem:[#allocation3] sm:$0xff] %vm548_vm3, %v1090_v36  ;;  %vm358_vm5 = vcmask 0   ;;  %s914_s17 = sshll.u32 %s1079_s27, 4  ;;  %s330_s22 = scalar_lea.vmem [#allocation7], %s840_s16 }
  0x19   : > { %397 = vmatpush.bf16.msra.mxu0 %v920_v2  ;;  %448 = vmatpush.bf16.msra.mxu1 %v924_v4  ;;  %v933_v27 = vld [vmem:[%s1307_s6] sm:$0xff]  ;;  %v602_v30 = vld [vmem:[%s344_s12 + $0x8] sm:$0xff]  ;;  %550 = vst.msk [vmem:[#allocation3 + $0x8] sm:$0xff] %vm548_vm3, %v1090_v36  ;;  %s734_s23 = sshll.u32 %s330_s22, 4  ;;  %s736_s30 = sshll.u32 %s732_s21, 4  ;;  %s735_s23 = int_to_ptr.vmem [resolvable:$true] %s734_s23  ;;  %s737_s30 = int_to_ptr.hbm [resolvable:$true] %s736_s30 }
  0x1a   : > { %v601_v28 = vld [vmem:[%s344_s12] sm:$0xff]  ;;  %553 = vst.msk [vmem:[#allocation5] sm:$0xff] %vm548_vm3, %v1091_v43  ;;  %s722_s8 = scalar_lea.sflag [#allocation8], %s328_s15  ;;  %s1023_s10 = sshra.s32 %s737_s30, 4  ;;  %s1024_s10 = int_to_ptr.hbm [resolvable:$true] %s1023_s10 }
  0x1b   : > { %484 = vmatpush.bf16.msra.mxu2 %v926_v13  ;;  %534 = vmatpush.bf16.msra.mxu3 %v930_v18  ;;  %551 = vst.msk [vmem:[#allocation4] sm:$0xff] %vm548_vm3, %v1091_v43  ;;  %s1025_s12 = scalar_lea.hbm %s1024_s10, 8  ;;  %p1030_p1 = scmp.lt.s32.totalorder %s1024_s10, %s1308_s7 }
  0x1c   : > { %857 = vmatmul.msk.bf16.vlgmr.msra.gmra.mxu0 %vm386_vm0, %v919_v3  ;;  %606 = vperm.xlu2 %994, %v601_v28   ;;  %552 = vst.msk [vmem:[#allocation4 + $0x8] sm:$0xff] %vm548_vm3, %v1091_v43  ;;  %p1026_p12 = scmp.ne.s32.totalorder %s1024_s10, %s1025_s12  ;;  %p1031_p2 = scmp.lt.s32.totalorder %s1029_s19, %s1025_s12 }
  0x1d   : > { %449 = vmatpush.bf16.msra.mxu1 %v923_v5  ;;  %588 = vmatpush.bf16.msrb.mxu0 %v934_v26  ;;  %554 = vst.msk [vmem:[#allocation5 + $0x8] sm:$0xff] %vm548_vm3, %v1091_v43 }
  0x1e   : > { %359 = vst.msk [vmem:[#allocation6] sm:$0x1] %vm358_vm5, %v1091_v43  ;;  %p1027_p13 = pnand %p1026_p12, %p1172_p4  ;;  %p1032_p3 = por %p1031_p2, %p1030_p1 }
  0x1f   : > { %535 = vmatpush.bf16.msra.mxu3 %v929_v19  ;;  %v624_v45 = vld [vmem:[#allocation3] sm:$0xff] }
  0x20   : > { %v625_v52 = vld [vmem:[#allocation3 + $0x8] sm:$0xff]  ;;  %p1028_p0 = pneg %p1027_p13 }
  0x21   : > { %450 = vmatpush.bf16.msra.mxu1 %v922_v6  ;;  %589 = vmatpush.bf16.msrb.mxu0 %v933_v27  ;;  %v603_v46 = vld [vmem:[#allocation5] sm:$0xff] }
  0x22   : > { %v638_v4 = vld [vmem:[#allocation4] sm:$0xff]  ;;  %p1033_p5 = pnand %p1032_p3, %p1028_p0 }
  0x23   : > { %536 = vmatpush.bf16.msra.mxu3 %v928_v20  ;;  %v688_v20 = vshrl.u32 %v597_v37, 7 }
  0x24   : > { %609 = vperm.xlu2 %994, %v602_v30  }
  0x76   : > { %v607_v39 = vpop.permute.xlu2 %606 }
  0x77   : > { %vm611_vm4 = vcmp.eq.s32.totalorder %v598_v38, %v607_v39 }
  0x7e   : > { %v610_v44 = vpop.permute.xlu2 %609 }
  0x7f   : > { %vm612_vm6 = vcmp.eq.s32.totalorder %v598_v38, %v610_v44 }
  0x99   : > { %v399_v7 = vpop.f32.mrf.mxu0 }
  0x9a   : > { %v404_v9 = vmax.f32 %v399_v7, 0.0 }
  0xa1   : > { %v401_v8 = vpop.f32.mrf.mxu0 }
  0xa2   : > { %v405_v10 = vmax.f32 %v401_v8, 0.0 }
  0xa4   : > { %v406_v11 = vpack.c.bf16 %v405_v10, %v404_v9  ;;  %v639_v9 = vld [vmem:[#allocation4 + $0x8] sm:$0xff]  ;;  %v604_v10 = vld [vmem:[#allocation5 + $0x8] sm:$0xff] }
  0xa6   : > { %874 = vmatmul.msk.bf16.vlgmr.msra.gmra.mxu1 %vm439_vm1, %v406_v11 }
 0x123   : > { %v452_v15 = vpop.f32.mrf.mxu1 }
 0x12b   : > { %v454_v16 = vpop.f32.mrf.mxu1 }
 0x12c   : > { %v457_v17 = vpack.c.bf16 %v454_v16, %v452_v15 }
 0x12e   : > { %883 = vmatmul.msk.bf16.vlgmr.msra.gmra.mxu2 %vm386_vm0, %v457_v17 }
 0x1b1   : > { %v486_v21 = vpop.f32.mrf.mxu2 }
 0x1b2   : > { %v491_v23 = vmax.f32 %v486_v21, 0.0  ;;  %v690_v21 = vstv %s914_s17 }
 0x1b9   : > { %v488_v22 = vpop.f32.mrf.mxu2 }
 0x1ba   : > { %v492_v24 = vmax.f32 %v488_v22, 0.0  ;;  %v689_v22 = vadd.s32 8, %v688_v20 }
 0x1bc   : > { %v493_v25 = vpack.c.bf16 %v492_v24, %v491_v23  ;;  %v692_v27 = vadd.s32 %v690_v21, %v689_v22 }
 0x1be   : > { %900 = vmatmul.msk.bf16.vlgmr.msra.gmra.mxu3 %vm439_vm1, %v493_v25  ;;  %v691_v25 = vadd.s32 %v690_v21, %v688_v20  ;;  %vm694_vm8 = vcmp.lt.s32.totalorder %v692_v27, 16 }
 0x1c0   : > { %vm693_vm7 = vcmp.lt.s32.totalorder %v691_v25, 16 }
 0x241   : > { %v538_v31 = vpop.f32.mrf.mxu3 }
 0x242   : > { %v543_v32 = vpack.c.bf16 %v538_v31, %v538_v31 }
 0x244   : > { %546 = vst.msk [vmem:[#allocation2] sm:$0xf] %vm545_vm2, %v543_v32 }
 0x249   : > { %v540_v33 = vpop.f32.mrf.mxu3 }
 0x24a   : > { %v544_v34 = vpack.c.bf16 %v540_v33, %v540_v33 }
 0x24c   : > { %547 = vst.msk [vmem:[#allocation2 + $0x4] sm:$0xf] %vm545_vm2, %v544_v34 }
 0x253   : > { %v932_v35 = vld [vmem:[#allocation2] sm:$0xff] }
 0x254   : > { %913 = vmatmul.msk.bf16.vlgmr.msrb.gmra.mxu0 %vm386_vm0, %v932_v35 }
 0x2d1   : > { %v591_v40 = vpop.f32.mrf.mxu0 }
 0x2d2   : > { %626 = vmax.xlane.f32.xlu0 %v591_v40  ;;  %v613_v41 = vsel %vm611_vm4, %v591_v40, 0.0 }
 0x2d3   : > { %615 = vadd.xlane.f32.xlu2 %v613_v41 }
 0x2d9   : > { %v593_v42 = vpop.f32.mrf.mxu0 }
 0x2da   : > { %628 = vmax.xlane.f32.xlu0 %v593_v42  ;;  %v614_v0 = vsel %vm612_vm6, %v593_v42, 0.0 }
 0x345   : > { %v627_v47 = vpop.xlane.xlu0 %626 }
 0x346   : > { %v630_v48 = vmax.f32 %v624_v45, %v627_v47  ;;  %v616_v49 = vpop.xlane.xlu2 %615 }
 0x347   : > { %v619_v50 = vadd.f32 %v616_v49, %v603_v46 }
 0x348   : > { %v632_v51 = vsub.f32 %v624_v45, %v630_v48  ;;  %666 = vst.msk [vmem:[#allocation3] sm:$0xff] %vm548_vm3, %v630_v48  ;;  %644 = vperm.xlu1 %993, %v630_v48   ;;  %v697_v45 = vld [vmem:[#allocation6] sm:$0x1] }
 0x349   : > { %622 = vst.msk [vmem:[#allocation5] sm:$0xff] %vm548_vm3, %v619_v50 }
 0x34a   : > { %v634_v1 = vmul.f32 1.442695, %v632_v51 }
 0x34d   : > { %v629_v53 = vpop.xlane.xlu0 %628 }
 0x34e   : > { %v631_v54 = vmax.f32 %v625_v52, %v629_v53 }
 0x34f   : > { %v671_v23 = vld [vmem:[#allocation3] sm:$0xff] }
 0x350   : > { %v633_v55 = vsub.f32 %v625_v52, %v631_v54  ;;  %667 = vst.msk [vmem:[#allocation3 + $0x8] sm:$0xff] %vm548_vm3, %v631_v54  ;;  %649 = vperm.xlu1 %993, %v631_v54   ;;  %v681_v28 = vld [vmem:[#allocation5] sm:$0xff] }
 0x352   : > { %v636_v2 = vmul.f32 1.442695, %v633_v55 }
 0x357   : > { %v672_v31 = vld [vmem:[#allocation3 + $0x8] sm:$0xff] }
 0x3ba   : > { %v645_v56 = vpop.permute.xlu1 %644 }
 0x3bb   : > { %v652_v57 = vsub.f32 %v591_v40, %v645_v56 }
 0x3bd   : > { %v654_v58 = vmul.f32 1.442695, %v652_v57 }
 0x3bf   : > { %997 = vpow2.f32 %v654_v58 }
 0x3c2   : > { %v650_v59 = vpop.permute.xlu1 %649 }
 0x3c3   : > { %v653_v60 = vsub.f32 %v593_v42, %v650_v59 }
 0x3c5   : > { %v998_v61 = vpop.eup %997  ;;  %v656_v62 = vmul.f32 1.442695, %v653_v60 }
 0x3c6   : > { %658 = vadd.xlane.f32.xlu0 %v998_v61 }
 0x3c7   : > { %999 = vpow2.f32 %v656_v62 }
 0x3c8   : > { %1001 = vpow2.f32 %v634_v1 }
 0x3c9   : > { %1003 = vpow2.f32 %v636_v2 }
 0x3cd   : > { %v1000_v63 = vpop.eup %999 }
 0x3ce   : > { %660 = vadd.xlane.f32.xlu1 %v1000_v63  ;;  %617 = vadd.xlane.f32.xlu0 %v614_v0  ;;  %v1002_v3 = vpop.eup %1001 }
 0x3cf   : > { %v640_v5 = vmul.f32 %v1002_v3, %v638_v4  ;;  %v1004_v8 = vpop.eup %1003 }
 0x3d0   : > { %v641_v11 = vmul.f32 %v1004_v8, %v639_v9 }
 0x439   : > { %v659_v6 = vpop.xlane.xlu0 %658 }
 0x43a   : > { %v662_v7 = vadd.f32 %v659_v6, %v640_v5 }
 0x43c   : > { %664 = vst.msk [vmem:[#allocation4] sm:$0xff] %vm548_vm3, %v662_v7 }
 0x441   : > { %v661_v12 = vpop.xlane.xlu1 %660  ;;  %v618_v13 = vpop.xlane.xlu0 %617 }
 0x442   : > { %v663_v14 = vadd.f32 %v661_v12, %v641_v11  ;;  %v620_v15 = vadd.f32 %v618_v13, %v604_v10 }
 0x443   : > { %v673_v16 = vld [vmem:[#allocation4] sm:$0xff] }
 0x444   : > { %1005 = vlog2.f32 %v673_v16  ;;  %665 = vst.msk [vmem:[#allocation4 + $0x8] sm:$0xff] %vm548_vm3, %v663_v14 }
 0x445   : > { %623 = vst.msk [vmem:[#allocation5 + $0x8] sm:$0xff] %vm548_vm3, %v620_v15 }
 0x44a   : > { %v1006_v17 = vpop.eup %1005 }
 0x44b   : > { %v676_v18 = vmul.f32 0.6931472, %v1006_v17  ;;  %v674_v19 = vld [vmem:[#allocation4 + $0x8] sm:$0xff] }
 0x44c   : > { %1007 = vlog2.f32 %v674_v19  ;;  %v682_v33 = vld [vmem:[#allocation5 + $0x8] sm:$0xff] }
 0x44d   : > { %v679_v24 = vadd.f32 %v676_v18, %v671_v23 }
 0x44f   : > { %v683_v29 = vsub.f32 %v679_v24, %v681_v28 }
 0x451   : > { %v695_v34 = vsel %vm693_vm7, %v683_v29, 0.0 }
 0x452   : > { %v1008_v26 = vpop.eup %1007  ;;  %v698_v37 = vsel %vm548_vm3, %v695_v34, 0.0 }
 0x453   : > { %v678_v30 = vmul.f32 0.6931472, %v1008_v26 }
 0x455   : > { %v680_v32 = vadd.f32 %v678_v30, %v672_v31 }
 0x457   : > { %v684_v35 = vsub.f32 %v680_v32, %v682_v33 }
 0x459   : > { %v696_v36 = vsel %vm694_vm8, %v684_v35, 0.0 }
 0x45a   : > { %v699_v38 = vsel %vm548_vm3, %v696_v36, 0.0 }
 0x45b   : > { %v700_v39 = vadd.f32 %v699_v38, %v698_v37 }
 0x45d   : > { %v701_v40 = vrot.slane %v700_v39, 4 }
 0x45f   : > { %v702_v41 = vadd.f32 %v701_v40, %v700_v39 }
 0x461   : > { %v703_v42 = vrot.slane %v702_v41, 2 }
 0x463   : > { %v704_v43 = vadd.f32 %v703_v42, %v702_v41 }
 0x465   : > { %v705_v44 = vrot.slane %v704_v43, 1 }
 0x467   : > { %v706_v46 = vadd.f32 %v705_v44, %v704_v43 }
 0x469   : > { %v707_v47 = vadd.f32 %v706_v46, %v697_v45 }
 0x46b   : > { %709 = vst.msk [vmem:[#allocation6] sm:$0x1] %vm358_vm5, %v707_v47 }
 0x472   : > { %v996_v48 = vld [vmem:[#allocation6] ss:$0 sm:$0xff] }
 0x473   : > { %717 = vperm.xlu0 %995, %v996_v48  }
 0x4e5   : > { %v718_v49 = vpop.permute.xlu0 %717 }
 0x4e6   : > { %720 = vst [vmem:[%s330_s22] sm:$0xff] %v718_v49 }
 0x4e7   : > { %1036 = shalt.err (!%p1033_p5)
}
 0x4e8   : > { %935 = dma.vmem_to_hbm [thread:$0]  (%p1172_p4), %s735_s23, 128, %s737_s30, %s722_s8  }
 0x4e9 PF: > { %p941_p6 = scmp.ge.s32.totalorder %s1087_s29, 2  ;;  %s748_s15 = sand.u32 1, %s1067_s24  }
 0x4ea   : > { %s749_s20 = scalar_lea.sflag [#allocation8], %s748_s15 }
 0x4eb   : > { %p938_p7 = pnand %p941_p6, %p1179_p8 }
 0x4ed   : > { %p939_p9 = pneg %p938_p7 }
 0x4ef   : > { %1062 = dma.done.wait (%p939_p9), %s749_s20, 128  }
 0x4f0   : > { %1064 = vsyncadd (%p939_p9), %s749_s20, 4294967168  ;;  %s20_s29 = sadd.s32 1, %s1087_s29   ;;  %s1311_s24 = smov %s1071_s25 }
 0x4f1   : > { %p17_p10 = scmp.ge.s32.totalorder %s20_s29, 4   ;;  %s1312_s25 = smov %s1075_s26 }
 0x4f2   : > { %s1313_s26 = smov %s1185_s14  ;;  %s1314_s27 = smov %s1083_s28 }
 0x4f3   : > { %s1315_s28 = smov %s1317_s9  ;;  %19 = sbr.rel (!%p17_p10) target bundleno = 4 (0x4), region = 105 }
 0x4f8   :  { %755 = vsyncpa [#allocation8], 1 }
 0x4f9   :  { %757 = vsyncpa [#allocation8 + $0x1], 1 }

// kernel: tpu_custom_call.1
= control target key start
LH: loop header
LB: loop body
LE: loop exit
PB: predicated region body
PF: predicated region fallthrough
CT: control target
= control target key end

     0   :  { %12 = vsyncpa [#allocation8], 0  ;;  %s1301_s0 = inlined_call_operand.vmem [shape: bf16[32,32], index: 0, kind: input, shape index: {}]   ;;  %s1302_s1 = inlined_call_operand.vmem [shape: s32[32,1], index: 1, kind: input, shape index: {}]   ;;  %s1303_s2 = inlined_call_operand.vmem [shape: bf16[32,64], index: 2, kind: input, shape index: {}]   ;;  %s1304_s3 = inlined_call_operand.vmem [shape: bf16[64,32], index: 3, kind: input, shape index: {}]   ;;  %s1305_s4 = inlined_call_operand.vmem [shape: bf16[32,64], index: 4, kind: input, shape index: {}]   ;;  %s1306_s5 = inlined_call_operand.vmem [shape: bf16[64,32], index: 5, kind: input, shape index: {}]   ;;  %s1307_s6 = inlined_call_operand.vmem [shape: bf16[32,128], index: 6, kind: input, shape index: {}]   ;;  %s1308_s7 = inlined_call_operand.hbm [shape: f32[2,8,128], index: 7, kind: output, shape index: {}]  }
   0x1   :  { %14 = vsyncpa [#allocation8 + $0x1], 0  ;;  %s1132_s24 = smov 0   ;;  %s1134_s25 = smov 0  }
   0x2   :  { %s1136_s26 = smov 0   ;;  %s1138_s27 = smov 0  }
   0x3   :  { %s1140_s28 = smov 0   ;;  %s1142_s29 = smov 0  }
   0x4 LB: > { %s834_s30 = sadd.s32 4294967295, %s1087_s29   ;;  %s835_s8 = sadd.s32 4294967294, %s1087_s29   ;;  %s1087_s29 = sphi %s1142_s29, %s20_s29   ;;  %s1083_s28 = sphi %s1140_s28, %s1315_s28   ;;  %s1079_s27 = sphi %s1138_s27, %s1314_s27   ;;  %s1075_s26 = sphi %s1136_s26, %s1313_s26   ;;  %s1071_s25 = sphi %s1134_s25, %s1312_s25   ;;  %s1067_s24 = sphi %s1132_s24, %s1311_s24  }
   0x5   : > { %s39_s9 = sadd.s32 1, %s1083_s28  ;;  %s212_s10 = sadd.s32 1, %s1075_s26 }
   0x6   : > { %p41_p0 = scmp.ge.s32.totalorder %s39_s9, 2  ;;  %p222_p1 = scmp.ne.s32.totalorder %s1075_s26, %s1071_s25 }
   0x7   : > { %p223_p2 = scmp.eq.s32.totalorder %s834_s30, 1  ;;  %p228_p3 = scmp.ne.s32.totalorder %s1071_s25, %s1067_s24 }
   0x8   : > { %s1317_s9 = smov (%p41_p0, %s39_s9), 0  ;;  %p229_p5 = scmp.eq.s32.totalorder %s835_s8, 1 }
   0x9   : > { %p1172_p4 = por %p223_p2, %p222_p1  ;;  %s209_s12 = ssub.s32 %s1083_s28, %s1317_s9 }
   0xa   : > { %p839_p6 = scmp.ge.s32.totalorder %s1087_s29, 1  ;;  %p210_p7 = scmp.eq.s32.totalorder %s209_s12, 0 }
   0xb   : > { %p1179_p8 = por %p229_p5, %p228_p3  ;;  %p288_p9 = scmp.lt.s32.totalorder %s1087_s29, 3 }
   0xc   : > { %s1185_s14 = scalar_select %p210_p7, %s1075_s26, %s212_s10  }
   0xd   : > { %p289_p10 = pnand %p839_p6, %p288_p9 }
   0xe   : > { %s841_s17 = sshll.u32 (!%p289_p10), %s1079_s27, 1  ;;  %s328_s15 = sand.u32 (!%p289_p10), 1, %s1071_s25  }
   0xf   : > { %292 = sbr.rel (%p289_p10) target bundleno = 1257 (0x4e9), region = 48  ;;  %p333_p11 = scmp.lt.s32.totalorder (!%p289_p10), %s841_s17, 3 }
  0x10   : > { %s840_s16 = sshll.u32 (!%p289_p10), %s328_s15, 3  ;;  %s916_s18 = sshll.u32 (!%p289_p10), %s1079_s27, 3 }
  0x11   : > { %s732_s21 = scalar_lea.hbm (!%p289_p10), %s1308_s7, %s916_s18  ;;  %s1029_s19 = scalar_lea.hbm (!%p289_p10), %s1308_s7, 16 }
  0x14   : > { %v921_v0 = vld [vmem:[%s1303_s2 + $0x8] sm:$0xff]  ;;  %v925_v1 = vld [vmem:[%s1304_s3 + $0x18] sm:$0xff]  ;;  %v920_v2 = vld [vmem:[%s1303_s2] sm:$0xff]  ;;  %s1319_s17 = smov (!%p333_p11, %s841_s17), 3  ;;  %vm386_vm0 = vcmask 261120   ;;  %vm439_vm1 = vcmask 523264   ;;  %v597_v37 = vlaneseq }
  0x15   : > { %396 = vmatpush.bf16.msra.mxu0 %v921_v0  ;;  %447 = vmatpush.bf16.msra.mxu1 %v925_v1  ;;  %s842_s22 = sshll.u32 %s1319_s17, 2  ;;  %v924_v4 = vld [vmem:[%s1304_s3 + $0x10] sm:$0xff]  ;;  %v923_v5 = vld [vmem:[%s1304_s3 + $0x8] sm:$0xff]  ;;  %v922_v6 = vld [vmem:[%s1304_s3] sm:$0xff]  ;;  %s844_s30 = sshll.u32 %s1319_s17, 3  ;;  %v1089_v29 = vmov 0  }
  0x16   : > { %s336_s8 = scalar_lea.vmem %s1301_s0, %s842_s22  ;;  %v927_v12 = vld [vmem:[%s1305_s4 + $0x8] sm:$0xff]  ;;  %v926_v13 = vld [vmem:[%s1305_s4] sm:$0xff]  ;;  %v931_v14 = vld [vmem:[%s1306_s5 + $0x18] sm:$0xff]  ;;  %s344_s12 = scalar_lea.vmem %s1302_s1, %s844_s30  ;;  %994 = vset.pattern.permute.xlu2 %v1089_v29  ;;  %993 = vset.pattern.permute.xlu1 %v1089_v29  ;;  %vm545_vm2 = vcmask 257024   ;;  %vm548_vm3 = vcmask 7168   ;;  %v598_v38 = vand.u32 127, %v597_v37 }
  0x17   : > { %v919_v3 = vld [vmem:[%s336_s8] sm:$0xff]  ;;  %483 = vmatpush.bf16.msra.mxu2 %v927_v12  ;;  %533 = vmatpush.bf16.msra.mxu3 %v931_v14  ;;  %v930_v18 = vld [vmem:[%s1306_s5 + $0x10] sm:$0xff]  ;;  %v929_v19 = vld [vmem:[%s1306_s5 + $0x8] sm:$0xff]  ;;  %v1090_v36 = vmov -1e+30   ;;  %v1091_v43 = vmov 0.0  }
  0x18   : > { %v928_v20 = vld [vmem:[%s1306_s5] sm:$0xff]  ;;  %v934_v26 = vld [vmem:[%s1307_s6 + $0x8] sm:$0xff]  ;;  %995 = vset.pattern.permute.xlu0 %v1089_v29  ;;  %549 = vst.msk [vmem:[#allocation3] sm:$0xff] %vm548_vm3, %v1090_v36  ;;  %vm358_vm5 = vcmask 0   ;;  %s914_s17 = sshll.u32 %s1079_s27, 4  ;;  %s330_s22 = scalar_lea.vmem [#allocation7], %s840_s16 }
  0x19   : > { %397 = vmatpush.bf16.msra.mxu0 %v920_v2  ;;  %448 = vmatpush.bf16.msra.mxu1 %v924_v4  ;;  %v933_v27 = vld [vmem:[%s1307_s6] sm:$0xff]  ;;  %v602_v30 = vld [vmem:[%s344_s12 + $0x8] sm:$0xff]  ;;  %550 = vst.msk [vmem:[#allocation3 + $0x8] sm:$0xff] %vm548_vm3, %v1090_v36  ;;  %s734_s23 = sshll.u32 %s330_s22, 4  ;;  %s736_s30 = sshll.u32 %s732_s21, 4  ;;  %s735_s23 = int_to_ptr.vmem [resolvable:$true] %s734_s23  ;;  %s737_s30 = int_to_ptr.hbm [resolvable:$true] %s736_s30 }
  0x1a   : > { %v601_v28 = vld [vmem:[%s344_s12] sm:$0xff]  ;;  %553 = vst.msk [vmem:[#allocation5] sm:$0xff] %vm548_vm3, %v1091_v43  ;;  %s722_s8 = scalar_lea.sflag [#allocation8], %s328_s15  ;;  %s1023_s10 = sshra.s32 %s737_s30, 4  ;;  %s1024_s10 = int_to_ptr.hbm [resolvable:$true] %s1023_s10 }
  0x1b   : > { %484 = vmatpush.bf16.msra.mxu2 %v926_v13  ;;  %534 = vmatpush.bf16.msra.mxu3 %v930_v18  ;;  %551 = vst.msk [vmem:[#allocation4] sm:$0xff] %vm548_vm3, %v1091_v43  ;;  %s1025_s12 = scalar_lea.hbm %s1024_s10, 8  ;;  %p1030_p1 = scmp.lt.s32.totalorder %s1024_s10, %s1308_s7 }
  0x1c   : > { %857 = vmatmul.msk.bf16.vlgmr.msra.gmra.mxu0 %vm386_vm0, %v919_v3  ;;  %606 = vperm.xlu2 %994, %v601_v28   ;;  %552 = vst.msk [vmem:[#allocation4 + $0x8] sm:$0xff] %vm548_vm3, %v1091_v43  ;;  %p1026_p12 = scmp.ne.s32.totalorder %s1024_s10, %s1025_s12  ;;  %p1031_p2 = scmp.lt.s32.totalorder %s1029_s19, %s1025_s12 }
  0x1d   : > { %449 = vmatpush.bf16.msra.mxu1 %v923_v5  ;;  %588 = vmatpush.bf16.msrb.mxu0 %v934_v26  ;;  %554 = vst.msk [vmem:[#allocation5 + $0x8] sm:$0xff] %vm548_vm3, %v1091_v43 }
  0x1e   : > { %359 = vst.msk [vmem:[#allocation6] sm:$0x1] %vm358_vm5, %v1091_v43  ;;  %p1027_p13 = pnand %p1026_p12, %p1172_p4  ;;  %p1032_p3 = por %p1031_p2, %p1030_p1 }
  0x1f   : > { %535 = vmatpush.bf16.msra.mxu3 %v929_v19  ;;  %v624_v45 = vld [vmem:[#allocation3] sm:$0xff] }
  0x20   : > { %v625_v52 = vld [vmem:[#allocation3 + $0x8] sm:$0xff]  ;;  %p1028_p0 = pneg %p1027_p13 }
  0x21   : > { %450 = vmatpush.bf16.msra.mxu1 %v922_v6  ;;  %589 = vmatpush.bf16.msrb.mxu0 %v933_v27  ;;  %v603_v46 = vld [vmem:[#allocation5] sm:$0xff] }
  0x22   : > { %v638_v4 = vld [vmem:[#allocation4] sm:$0xff]  ;;  %p1033_p5 = pnand %p1032_p3, %p1028_p0 }
  0x23   : > { %536 = vmatpush.bf16.msra.mxu3 %v928_v20  ;;  %v688_v20 = vshrl.u32 %v597_v37, 7 }
  0x24   : > { %609 = vperm.xlu2 %994, %v602_v30  }
  0x76   : > { %v607_v39 = vpop.permute.xlu2 %606 }
  0x77   : > { %vm611_vm4 = vcmp.eq.s32.totalorder %v598_v38, %v607_v39 }
  0x7e   : > { %v610_v44 = vpop.permute.xlu2 %609 }
  0x7f   : > { %vm612_vm6 = vcmp.eq.s32.totalorder %v598_v38, %v610_v44 }
  0x99   : > { %v399_v7 = vpop.f32.mrf.mxu0 }
  0x9a   : > { %v404_v9 = vmax.f32 %v399_v7, 0.0 }
  0xa1   : > { %v401_v8 = vpop.f32.mrf.mxu0 }
  0xa2   : > { %v405_v10 = vmax.f32 %v401_v8, 0.0 }
  0xa4   : > { %v406_v11 = vpack.c.bf16 %v405_v10, %v404_v9  ;;  %v639_v9 = vld [vmem:[#allocation4 + $0x8] sm:$0xff]  ;;  %v604_v10 = vld [vmem:[#allocation5 + $0x8] sm:$0xff] }
  0xa6   : > { %874 = vmatmul.msk.bf16.vlgmr.msra.gmra.mxu1 %vm439_vm1, %v406_v11 }
 0x123   : > { %v452_v15 = vpop.f32.mrf.mxu1 }
 0x12b   : > { %v454_v16 = vpop.f32.mrf.mxu1 }
 0x12c   : > { %v457_v17 = vpack.c.bf16 %v454_v16, %v452_v15 }
 0x12e   : > { %883 = vmatmul.msk.bf16.vlgmr.msra.gmra.mxu2 %vm386_vm0, %v457_v17 }
 0x1b1   : > { %v486_v21 = vpop.f32.mrf.mxu2 }
 0x1b2   : > { %v491_v23 = vmax.f32 %v486_v21, 0.0  ;;  %v690_v21 = vstv %s914_s17 }
 0x1b9   : > { %v488_v22 = vpop.f32.mrf.mxu2 }
 0x1ba   : > { %v492_v24 = vmax.f32 %v488_v22, 0.0  ;;  %v689_v22 = vadd.s32 8, %v688_v20 }
 0x1bc   : > { %v493_v25 = vpack.c.bf16 %v492_v24, %v491_v23  ;;  %v692_v27 = vadd.s32 %v690_v21, %v689_v22 }
 0x1be   : > { %900 = vmatmul.msk.bf16.vlgmr.msra.gmra.mxu3 %vm439_vm1, %v493_v25  ;;  %v691_v25 = vadd.s32 %v690_v21, %v688_v20  ;;  %vm694_vm8 = vcmp.lt.s32.totalorder %v692_v27, 16 }
 0x1c0   : > { %vm693_vm7 = vcmp.lt.s32.totalorder %v691_v25, 16 }
 0x241   : > { %v538_v31 = vpop.f32.mrf.mxu3 }
 0x242   : > { %v543_v32 = vpack.c.bf16 %v538_v31, %v538_v31 }
 0x244   : > { %546 = vst.msk [vmem:[#allocation2] sm:$0xf] %vm545_vm2, %v543_v32 }
 0x249   : > { %v540_v33 = vpop.f32.mrf.mxu3 }
 0x24a   : > { %v544_v34 = vpack.c.bf16 %v540_v33, %v540_v33 }
 0x24c   : > { %547 = vst.msk [vmem:[#allocation2 + $0x4] sm:$0xf] %vm545_vm2, %v544_v34 }
 0x253   : > { %v932_v35 = vld [vmem:[#allocation2] sm:$0xff] }
 0x254   : > { %913 = vmatmul.msk.bf16.vlgmr.msrb.gmra.mxu0 %vm386_vm0, %v932_v35 }
 0x2d1   : > { %v591_v40 = vpop.f32.mrf.mxu0 }
 0x2d2   : > { %626 = vmax.xlane.f32.xlu0 %v591_v40  ;;  %v613_v41 = vsel %vm611_vm4, %v591_v40, 0.0 }
 0x2d3   : > { %615 = vadd.xlane.f32.xlu2 %v613_v41 }
 0x2d9   : > { %v593_v42 = vpop.f32.mrf.mxu0 }
 0x2da   : > { %628 = vmax.xlane.f32.xlu0 %v593_v42  ;;  %v614_v0 = vsel %vm612_vm6, %v593_v42, 0.0 }
 0x345   : > { %v627_v47 = vpop.xlane.xlu0 %626 }
 0x346   : > { %v630_v48 = vmax.f32 %v624_v45, %v627_v47  ;;  %v616_v49 = vpop.xlane.xlu2 %615 }
 0x347   : > { %v619_v50 = vadd.f32 %v616_v49, %v603_v46 }
 0x348   : > { %v632_v51 = vsub.f32 %v624_v45, %v630_v48  ;;  %666 = vst.msk [vmem:[#allocation3] sm:$0xff] %vm548_vm3, %v630_v48  ;;  %644 = vperm.xlu1 %993, %v630_v48   ;;  %v697_v45 = vld [vmem:[#allocation6] sm:$0x1] }
 0x349   : > { %622 = vst.msk [vmem:[#allocation5] sm:$0xff] %vm548_vm3, %v619_v50 }
 0x34a   : > { %v634_v1 = vmul.f32 1.442695, %v632_v51 }
 0x34d   : > { %v629_v53 = vpop.xlane.xlu0 %628 }
 0x34e   : > { %v631_v54 = vmax.f32 %v625_v52, %v629_v53 }
 0x34f   : > { %v671_v23 = vld [vmem:[#allocation3] sm:$0xff] }
 0x350   : > { %v633_v55 = vsub.f32 %v625_v52, %v631_v54  ;;  %667 = vst.msk [vmem:[#allocation3 + $0x8] sm:$0xff] %vm548_vm3, %v631_v54  ;;  %649 = vperm.xlu1 %993, %v631_v54   ;;  %v681_v28 = vld [vmem:[#allocation5] sm:$0xff] }
 0x352   : > { %v636_v2 = vmul.f32 1.442695, %v633_v55 }
 0x357   : > { %v672_v31 = vld [vmem:[#allocation3 + $0x8] sm:$0xff] }
 0x3ba   : > { %v645_v56 = vpop.permute.xlu1 %644 }
 0x3bb   : > { %v652_v57 = vsub.f32 %v591_v40, %v645_v56 }
 0x3bd   : > { %v654_v58 = vmul.f32 1.442695, %v652_v57 }
 0x3bf   : > { %997 = vpow2.f32 %v654_v58 }
 0x3c2   : > { %v650_v59 = vpop.permute.xlu1 %649 }
 0x3c3   : > { %v653_v60 = vsub.f32 %v593_v42, %v650_v59 }
 0x3c5   : > { %v998_v61 = vpop.eup %997  ;;  %v656_v62 = vmul.f32 1.442695, %v653_v60 }
 0x3c6   : > { %658 = vadd.xlane.f32.xlu0 %v998_v61 }
 0x3c7   : > { %999 = vpow2.f32 %v656_v62 }
 0x3c8   : > { %1001 = vpow2.f32 %v634_v1 }
 0x3c9   : > { %1003 = vpow2.f32 %v636_v2 }
 0x3cd   : > { %v1000_v63 = vpop.eup %999 }
 0x3ce   : > { %660 = vadd.xlane.f32.xlu1 %v1000_v63  ;;  %617 = vadd.xlane.f32.xlu0 %v614_v0  ;;  %v1002_v3 = vpop.eup %1001 }
 0x3cf   : > { %v640_v5 = vmul.f32 %v1002_v3, %v638_v4  ;;  %v1004_v8 = vpop.eup %1003 }
 0x3d0   : > { %v641_v11 = vmul.f32 %v1004_v8, %v639_v9 }
 0x439   : > { %v659_v6 = vpop.xlane.xlu0 %658 }
 0x43a   : > { %v662_v7 = vadd.f32 %v659_v6, %v640_v5 }
 0x43c   : > { %664 = vst.msk [vmem:[#allocation4] sm:$0xff] %vm548_vm3, %v662_v7 }
 0x441   : > { %v661_v12 = vpop.xlane.xlu1 %660  ;;  %v618_v13 = vpop.xlane.xlu0 %617 }
 0x442   : > { %v663_v14 = vadd.f32 %v661_v12, %v641_v11  ;;  %v620_v15 = vadd.f32 %v618_v13, %v604_v10 }
 0x443   : > { %v673_v16 = vld [vmem:[#allocation4] sm:$0xff] }
 0x444   : > { %1005 = vlog2.f32 %v673_v16  ;;  %665 = vst.msk [vmem:[#allocation4 + $0x8] sm:$0xff] %vm548_vm3, %v663_v14 }
 0x445   : > { %623 = vst.msk [vmem:[#allocation5 + $0x8] sm:$0xff] %vm548_vm3, %v620_v15 }
 0x44a   : > { %v1006_v17 = vpop.eup %1005 }
 0x44b   : > { %v676_v18 = vmul.f32 0.6931472, %v1006_v17  ;;  %v674_v19 = vld [vmem:[#allocation4 + $0x8] sm:$0xff] }
 0x44c   : > { %1007 = vlog2.f32 %v674_v19  ;;  %v682_v33 = vld [vmem:[#allocation5 + $0x8] sm:$0xff] }
 0x44d   : > { %v679_v24 = vadd.f32 %v676_v18, %v671_v23 }
 0x44f   : > { %v683_v29 = vsub.f32 %v679_v24, %v681_v28 }
 0x451   : > { %v695_v34 = vsel %vm693_vm7, %v683_v29, 0.0 }
 0x452   : > { %v1008_v26 = vpop.eup %1007  ;;  %v698_v37 = vsel %vm548_vm3, %v695_v34, 0.0 }
 0x453   : > { %v678_v30 = vmul.f32 0.6931472, %v1008_v26 }
 0x455   : > { %v680_v32 = vadd.f32 %v678_v30, %v672_v31 }
 0x457   : > { %v684_v35 = vsub.f32 %v680_v32, %v682_v33 }
 0x459   : > { %v696_v36 = vsel %vm694_vm8, %v684_v35, 0.0 }
 0x45a   : > { %v699_v38 = vsel %vm548_vm3, %v696_v36, 0.0 }
 0x45b   : > { %v700_v39 = vadd.f32 %v699_v38, %v698_v37 }
 0x45d   : > { %v701_v40 = vrot.slane %v700_v39, 4 }
 0x45f   : > { %v702_v41 = vadd.f32 %v701_v40, %v700_v39 }
 0x461   : > { %v703_v42 = vrot.slane %v702_v41, 2 }
 0x463   : > { %v704_v43 = vadd.f32 %v703_v42, %v702_v41 }
 0x465   : > { %v705_v44 = vrot.slane %v704_v43, 1 }
 0x467   : > { %v706_v46 = vadd.f32 %v705_v44, %v704_v43 }
 0x469   : > { %v707_v47 = vadd.f32 %v706_v46, %v697_v45 }
 0x46b   : > { %709 = vst.msk [vmem:[#allocation6] sm:$0x1] %vm358_vm5, %v707_v47 }
 0x472   : > { %v996_v48 = vld [vmem:[#allocation6] ss:$0 sm:$0xff] }
 0x473   : > { %717 = vperm.xlu0 %995, %v996_v48  }
 0x4e5   : > { %v718_v49 = vpop.permute.xlu0 %717 }
 0x4e6   : > { %720 = vst [vmem:[%s330_s22] sm:$0xff] %v718_v49 }
 0x4e7   : > { %1036 = shalt.err (!%p1033_p5)
}
 0x4e8   : > { %935 = dma.vmem_to_hbm [thread:$0]  (%p1172_p4), %s735_s23, 128, %s737_s30, %s722_s8  }
 0x4e9 PF: > { %p941_p6 = scmp.ge.s32.totalorder %s1087_s29, 2  ;;  %s748_s15 = sand.u32 1, %s1067_s24  }
 0x4ea   : > { %s749_s20 = scalar_lea.sflag [#allocation8], %s748_s15 }
 0x4eb   : > { %p938_p7 = pnand %p941_p6, %p1179_p8 }
 0x4ed   : > { %p939_p9 = pneg %p938_p7 }
 0x4ef   : > { %1062 = dma.done.wait (%p939_p9), %s749_s20, 128  }
 0x4f0   : > { %1064 = vsyncadd (%p939_p9), %s749_s20, 4294967168  ;;  %s20_s29 = sadd.s32 1, %s1087_s29   ;;  %s1311_s24 = smov %s1071_s25 }
 0x4f1   : > { %p17_p10 = scmp.ge.s32.totalorder %s20_s29, 4   ;;  %s1312_s25 = smov %s1075_s26 }
 0x4f2   : > { %s1313_s26 = smov %s1185_s14  ;;  %s1314_s27 = smov %s1083_s28 }
 0x4f3   : > { %s1315_s28 = smov %s1317_s9  ;;  %19 = sbr.rel (!%p17_p10) target bundleno = 4 (0x4), region = 105 }
 0x4f8   :  { %755 = vsyncpa [#allocation8], 1 }
 0x4f9   :  { %757 = vsyncpa [#allocation8 + $0x1], 1 }

</bundles_post_ra>
